<compile_context>
chip_gen: v7x
topology: tpu7x:2x2x1
jax: 0.10.0
libtpu: 0.0.40
codegen_flags: <defaults>
</compile_context>

<pallas_src>
import numpy as np
import jax
import jax.numpy as jnp
from jax import lax
from jax.experimental import pallas as pl
from jax.experimental.pallas import tpu as pltpu


# --------------------------------------------------------------------------------------
# Kernel 1: per-phi class means + regularized covariance mix (everything before inv()).
# --------------------------------------------------------------------------------------
def class_stats_kernel(x_ref, lab_ref, means_ref, covmix_ref):
    """One phi sample per grid step.

    x_ref:      (1, N, D)    support features
    lab_ref:    (N, 1)       int32 labels in [0, C)
    means_ref:  (1, C, D)    out: class means
    covmix_ref: (1, C, D, D) out: lam_c*cov_c + (1-lam_c)*cov_task + I
    """
    x = x_ref[0].astype(jnp.float32)                       # (N, D)
    lab = lab_ref[...]                                     # (N, 1) int32
    n_total = x.shape[0]
    d = x.shape[1]
    num_classes = means_ref.shape[1]

    # Task-level covariance over the whole support set: Xc^T Xc / (N - 1).
    xc = x - jnp.mean(x, axis=0, keepdims=True)
    task_cov = lax.dot_general(
        xc, xc, (((0,), (0,)), ((), ())),
        preferred_element_type=jnp.float32) * (1.0 / (n_total - 1))     # (D, D)

    eye = (lax.broadcasted_iota(jnp.int32, (d, d), 0)
           == lax.broadcasted_iota(jnp.int32, (d, d), 1)).astype(jnp.float32)

    # Classes are few and static -> unroll; all ops stay 2-D (MXU/VPU friendly).
    for c in range(num_classes):
        m = (lab == c).astype(jnp.float32)                 # (N, 1) membership mask
        n_c = jnp.sum(m, axis=0, keepdims=True)            # (1, 1)
        mean_c = jnp.sum(m * x, axis=0, keepdims=True) / n_c   # (1, D)
        means_ref[0, c:c + 1, :] = mean_c.astype(means_ref.dtype)

        diff = x - mean_c                                  # (N, D) centered features
        # (masked diff)^T diff == centered class cov * (n_c - 1): rows outside class c are 0.
        cov_c = lax.dot_general(
            m * diff, diff, (((0,), (0,)), ((), ())),
            preferred_element_type=jnp.float32) / (n_c - 1.0)           # (D, D)
        lam = n_c / (n_c + 1.0)                            # (1, 1)
        covmix_ref[0, c] = (lam * cov_c + (1.0 - lam) * task_cov
                            + eye).astype(covmix_ref.dtype)


# --------------------------------------------------------------------------------------
# Kernel 2: negative Mahalanobis distances for one (phi sample, query tile).
# --------------------------------------------------------------------------------------
def maha_logits_kernel(q_ref, means_ref, prec_ref, out_ref):
    """
    q_ref:     (1, TQ, D)    query features
    means_ref: (1, C, D)     class means
    prec_ref:  (1, C, D, D)  class precision matrices
    out_ref:   (1, TQ, C)    out: -(mu_c - q)^T P_c (mu_c - q)
    """
    q = q_ref[0].astype(jnp.float32)                       # (TQ, D)
    num_classes = means_ref.shape[1]

    for c in range(num_classes):                           # static unroll over classes
        mu_c = means_ref[0, c:c + 1, :].astype(jnp.float32)    # (1, D)
        prec_c = prec_ref[0, c].astype(jnp.float32)            # (D, D)
        diff = mu_c - q                                        # (TQ, D) sublane broadcast
        half = jnp.dot(diff, prec_c,
                       preferred_element_type=jnp.float32)     # (TQ, D) on the MXU
        # Final contraction as VPU multiply + lane reduction (no width-1 MXU matmul).
        quad = jnp.sum(half * diff, axis=-1, keepdims=True)    # (TQ, 1)
        out_ref[0, :, c:c + 1] = (-quad).astype(out_ref.dtype)


# --------------------------------------------------------------------------------------
# Wrapper
# --------------------------------------------------------------------------------------
def _pick_q_tile(num_query):
    # Largest MXU-friendly query tile that evenly divides Q; tiny Q -> one full block.
    for t in (512, 256, 128):
        if num_query % t == 0:
            return t
    return num_query


def maha_classifier_forward(support_features, support_labels, query_features, num_classes):
    """Pallas version of MahaClassifier.forward.

    support_features: (P, N, D) float   (num_phi_samples, task_size, feat_dim)
    support_labels:   (N,)      int     labels in [0, num_classes)
    query_features:   (P, Q, D) float
    Returns (mean_logits (Q, num_classes), class_means (P, num_classes, D)).
    """
    P, N, D = support_features.shape
    Pq, Q, Dq = query_features.shape
    assert (Pq, Dq) == (P, D)
    C = int(num_classes)

    support_features = support_features.astype(jnp.float32)
    query_features = query_features.astype(jnp.float32)
    labels_2d = support_labels.astype(jnp.int32).reshape(N, 1)

    # ---- Kernel 1: class means + regularized covariance mix (grid over phi samples) ----
    means, covmix = pl.pallas_call(
        class_stats_kernel,
        out_shape=(
            jax.ShapeDtypeStruct((P, C, D), jnp.float32),
            jax.ShapeDtypeStruct((P, C, D, D), jnp.float32),
        ),
        grid_spec=pltpu.PrefetchScalarGridSpec(
            num_scalar_prefetch=0,
            grid=(P,),
            in_specs=[
                pl.BlockSpec((1, N, D), lambda p: (p, 0, 0)),
                pl.BlockSpec((N, 1), lambda p: (0, 0)),
            ],
            out_specs=[
                pl.BlockSpec((1, C, D), lambda p: (p, 0, 0)),
                pl.BlockSpec((1, C, D, D), lambda p: (p, 0, 0, 0)),
            ],
        ),
        compiler_params=pltpu.CompilerParams(dimension_semantics=("parallel",)),
    )(support_features, labels_2d)

    # TODO(synk): torch.linalg.inv has no Pallas/Mosaic equivalent; batched inverse stays in XLA.
    precisions = jnp.linalg.inv(covmix)                    # (P, C, D, D)

    # ---- Kernel 2: Mahalanobis logits, grid over (phi samples, query tiles) ----
    tq = _pick_q_tile(Q)
    sample_logits = pl.pallas_call(
        maha_logits_kernel,
        out_shape=jax.ShapeDtypeStruct((P, Q, C), jnp.float32),
        grid_spec=pltpu.PrefetchScalarGridSpec(
            num_scalar_prefetch=0,
            grid=(P, Q // tq),          # query-tile axis innermost: means/prec not re-fetched
            in_specs=[
                pl.BlockSpec((1, tq, D), lambda p, qi: (p, qi, 0)),
                pl.BlockSpec((1, C, D), lambda p, qi: (p, 0, 0)),
                pl.BlockSpec((1, C, D, D), lambda p, qi: (p, 0, 0, 0)),
            ],
            out_specs=pl.BlockSpec((1, tq, C), lambda p, qi: (p, qi, 0)),
        ),
        compiler_params=pltpu.CompilerParams(
            dimension_semantics=("parallel", "parallel")),
    )(query_features, means, precisions)

    mean_logits = jnp.mean(sample_logits, axis=0)          # (Q, C)
    return mean_logits, means


# --------------------------------------------------------------------------------------
# Pure NumPy (float64) reference: faithful port of the PyTorch module.
# --------------------------------------------------------------------------------------
def _estimate_cov_np(examples):
    x = np.swapaxes(examples, 1, 2)                        # (P, D, n)
    factor = 1.0 / (x.shape[-1] - 1)
    x = x - x.mean(axis=-1, keepdims=True)
    return factor * np.matmul(x, np.swapaxes(x, 1, 2))


def reference_forward_np(support_features, support_labels, query_features):
    sup = np.asarray(support_features, np.float64)
    qry = np.asarray(query_features, np.float64)
    lab = np.asarray(support_labels)
    _, _, D = sup.shape

    task_cov = _estimate_cov_np(sup)
    means_list, prec_list = [], []
    for c in np.unique(lab):
        cls = sup[:, lab == c, :]                          # (P, n_c, D)
        means_list.append(cls.mean(axis=1))
        n_c = cls.shape[1]
        lam = n_c / (n_c + 1)
        cov = lam * _estimate_cov_np(cls) + (1 - lam) * task_cov + np.eye(D)
        prec_list.append(np.linalg.inv(cov))
    class_means = np.stack(means_list, axis=1)             # (P, C, D)
    precisions = np.stack(prec_list, axis=1)               # (P, C, D, D)

    diff = class_means[:, None, :, :] - qry[:, :, None, :]             # (P, Q, C, D)
    half = np.einsum('pqcd,pcde->pqce', diff, precisions)
    sample_logits = -(half * diff).sum(-1)                              # (P, Q, C)
    return sample_logits.mean(axis=0), class_means


if __name__ == "__main__":
    key = jax.random.PRNGKey(0)
    k_sup, k_qry = jax.random.split(key)

    P = 2            # num_phi_samples
    C = 4            # number of classes
    K_SHOT = 4       # support examples per class
    N = C * K_SHOT   # task (support) size
    Q = 16           # number of queries
    D = 128          # feat_dim (lane-aligned)

    support_features = jax.random.normal(k_sup, (P, N, D), jnp.float32)
    query_features = jax.random.normal(k_qry, (P, Q, D), jnp.float32)
    support_labels = jnp.tile(jnp.arange(C, dtype=jnp.int32), K_SHOT)   # every class present

    mean_logits, class_means = maha_classifier_forward(
        support_features, support_labels, query_features, num_classes=C)
    mean_logits = jax.block_until_ready(mean_logits)
    class_means = jax.block_until_ready(class_means)

    ref_logits, ref_means = reference_forward_np(
        support_features, support_labels, query_features)

    assert mean_logits.shape == (Q, C), mean_logits.shape
    assert class_means.shape == (P, C, D), class_means.shape
    np.testing.assert_allclose(np.asarray(class_means, np.float64), ref_means,
                               rtol=1e-5, atol=1e-5)
    np.testing.assert_allclose(np.asarray(mean_logits, np.float64), ref_logits,
                               rtol=5e-4, atol=1e-3)

    print("KERNEL_OK")
</pallas_src>

<mosaic_0001>
module attributes {stable_mosaic.version = 11 : i64} {
  func.func @class_stats_kernel(%arg0: i32, %arg1: memref<1x16x128xf32, #tpu.memory_space<vmem>>, %arg2: memref<16x1xi32, #tpu.memory_space<vmem>>, %arg3: memref<1x4x128xf32, #tpu.memory_space<vmem>>, %arg4: memref<1x4x128x128xf32, #tpu.memory_space<vmem>>) attributes {dimension_semantics = [#tpu.dimension_semantics<parallel>], iteration_bounds = array<i64: 2>, scalar_prefetch = 0 : i64, scratch_operands = 0 : i64, tpu.core_type = #tpu.core_type<tc>, window_params = [{transform_indices = @transform_0, window_bounds = array<i64: 1, 16, 128>}, {pipeline_mode = #tpu.pipeline_mode<synchronous>, transform_indices = @transform_1, window_bounds = array<i64: 16, 1>}, {transform_indices = @transform_2, window_bounds = array<i64: 1, 4, 128>}, {transform_indices = @transform_3, window_bounds = array<i64: 1, 4, 128, 128>}]} {
    %c0 = arith.constant 0 : index
    %c0_0 = arith.constant 0 : index
    %c0_1 = arith.constant 0 : index
    %0 = vector.load %arg1[%c0, %c0_0, %c0_1] : memref<1x16x128xf32, #tpu.memory_space<vmem>>, vector<1x16x128xf32>
    %1 = vector.shape_cast %0 : vector<1x16x128xf32> to vector<16x128xf32>
    %c0_2 = arith.constant 0 : index
    %c0_3 = arith.constant 0 : index
    %2 = vector.load %arg2[%c0_2, %c0_3] : memref<16x1xi32, #tpu.memory_space<vmem>>, vector<16x1xi32>
    %cst = arith.constant dense<0.000000e+00> : vector<128xf32>
    %3 = vector.multi_reduction <add>, %1, %cst [0] : vector<16x128xf32> to vector<128xf32>
    %4 = vector.shape_cast %3 : vector<128xf32> to vector<1x128xf32>
    %cst_4 = arith.constant 1.600000e+01 : f32
    %5 = vector.broadcast %cst_4 : f32 to vector<1x128xf32>
    %6 = arith.divf %4, %5 : vector<1x128xf32>
    %7 = vector.broadcast %6 : vector<1x128xf32> to vector<16x128xf32>
    %8 = arith.subf %1, %7 : vector<16x128xf32>
    %cst_5 = arith.constant dense<0.000000e+00> : vector<128x128xf32>
    %9 = tpu.matmul %8, %8, %cst_5 {dimension_numbers = #tpu.dot_dimension_numbers<[0], [0], [1], [1], [0, 1, 1, 1], [], []>} : vector<16x128xf32>, vector<16x128xf32>, vector<128x128xf32> -> vector<128x128xf32>
    %cst_6 = arith.constant 0.0666666701 : f32
    %10 = vector.broadcast %cst_6 : f32 to vector<128x128xf32>
    %11 = arith.mulf %9, %10 : vector<128x128xf32>
    %12 = tpu.iota {dimensions = array<i32: 0>} : vector<128x128xi32>
    %13 = tpu.iota {dimensions = array<i32: 1>} : vector<128x128xi32>
    %14 = arith.cmpi eq, %12, %13 : vector<128x128xi32>
    %15 = arith.extui %14 : vector<128x128xi1> to vector<128x128xi32>
    %16 = arith.sitofp %15 : vector<128x128xi32> to vector<128x128xf32>
    %c0_i32 = arith.constant 0 : i32
    %17 = vector.broadcast %c0_i32 : i32 to vector<16x1xi32>
    %18 = arith.cmpi eq, %2, %17 : vector<16x1xi32>
    %19 = arith.extui %18 : vector<16x1xi1> to vector<16x1xi32>
    %20 = arith.sitofp %19 : vector<16x1xi32> to vector<16x1xf32>
    %cst_7 = arith.constant dense<0.000000e+00> : vector<1xf32>
    %21 = vector.multi_reduction <add>, %20, %cst_7 [0] : vector<16x1xf32> to vector<1xf32>
    %22 = vector.shape_cast %21 : vector<1xf32> to vector<1x1xf32>
    %23 = vector.broadcast %20 : vector<16x1xf32> to vector<16x128xf32>
    %24 = arith.mulf %23, %1 : vector<16x128xf32>
    %cst_8 = arith.constant dense<0.000000e+00> : vector<128xf32>
    %25 = vector.multi_reduction <add>, %24, %cst_8 [0] : vector<16x128xf32> to vector<128xf32>
    %26 = vector.shape_cast %25 : vector<128xf32> to vector<1x128xf32>
    %27 = vector.broadcast %22 : vector<1x1xf32> to vector<1x128xf32>
    %28 = arith.divf %26, %27 : vector<1x128xf32>
    %c0_9 = arith.constant 0 : index
    %c0_10 = arith.constant 0 : index
    %c0_11 = arith.constant 0 : index
    %29 = vector.load %arg3[%c0_9, %c0_10, %c0_11] : memref<1x4x128xf32, #tpu.memory_space<vmem>>, vector<1x1x128xf32>
    %30 = vector.shape_cast %29 : vector<1x1x128xf32> to vector<1x128xf32>
    %31 = vector.shape_cast %28 : vector<1x128xf32> to vector<1x1x128xf32>
    tpu.vector_store %arg3[%c0_9, %c0_10, %c0_11], %31 {strides = array<i32>} : memref<1x4x128xf32, #tpu.memory_space<vmem>>, vector<1x1x128xf32>,
    %32 = vector.broadcast %28 : vector<1x128xf32> to vector<16x128xf32>
    %33 = arith.subf %1, %32 : vector<16x128xf32>
    %34 = vector.broadcast %20 : vector<16x1xf32> to vector<16x128xf32>
    %35 = arith.mulf %34, %33 : vector<16x128xf32>
    %cst_12 = arith.constant dense<0.000000e+00> : vector<128x128xf32>
    %36 = tpu.matmul %35, %33, %cst_12 {dimension_numbers = #tpu.dot_dimension_numbers<[0], [0], [1], [1], [0, 1, 1, 1], [], []>} : vector<16x128xf32>, vector<16x128xf32>, vector<128x128xf32> -> vector<128x128xf32>
    %cst_13 = arith.constant 1.000000e+00 : f32
    %37 = vector.broadcast %cst_13 : f32 to vector<1x1xf32>
    %38 = arith.subf %22, %37 : vector<1x1xf32>
    %39 = vector.broadcast %38 : vector<1x1xf32> to vector<128x128xf32>
    %40 = arith.divf %36, %39 : vector<128x128xf32>
    %cst_14 = arith.constant 1.000000e+00 : f32
    %41 = vector.broadcast %cst_14 : f32 to vector<1x1xf32>
    %42 = arith.addf %22, %41 : vector<1x1xf32>
    %43 = arith.divf %22, %42 : vector<1x1xf32>
    %44 = vector.broadcast %43 : vector<1x1xf32> to vector<128x128xf32>
    %45 = arith.mulf %44, %40 : vector<128x128xf32>
    %cst_15 = arith.constant 1.000000e+00 : f32
    %46 = vector.broadcast %cst_15 : f32 to vector<1x1xf32>
    %47 = arith.subf %46, %43 : vector<1x1xf32>
    %48 = vector.broadcast %47 : vector<1x1xf32> to vector<128x128xf32>
    %49 = arith.mulf %48, %11 : vector<128x128xf32>
    %50 = arith.addf %45, %49 : vector<128x128xf32>
    %51 = arith.addf %50, %16 : vector<128x128xf32>
    %c0_16 = arith.constant 0 : index
    %c0_17 = arith.constant 0 : index
    %c0_18 = arith.constant 0 : index
    %c0_19 = arith.constant 0 : index
    %52 = vector.load %arg4[%c0_16, %c0_17, %c0_18, %c0_19] : memref<1x4x128x128xf32, #tpu.memory_space<vmem>>, vector<1x1x128x128xf32>
    %53 = vector.shape_cast %52 : vector<1x1x128x128xf32> to vector<128x128xf32>
    %54 = vector.shape_cast %51 : vector<128x128xf32> to vector<1x1x128x128xf32>
    tpu.vector_store %arg4[%c0_16, %c0_17, %c0_18, %c0_19], %54 {strides = array<i32>} : memref<1x4x128x128xf32, #tpu.memory_space<vmem>>, vector<1x1x128x128xf32>,
    %c1_i32 = arith.constant 1 : i32
    %55 = vector.broadcast %c1_i32 : i32 to vector<16x1xi32>
    %56 = arith.cmpi eq, %2, %55 : vector<16x1xi32>
    %57 = arith.extui %56 : vector<16x1xi1> to vector<16x1xi32>
    %58 = arith.sitofp %57 : vector<16x1xi32> to vector<16x1xf32>
    %cst_20 = arith.constant dense<0.000000e+00> : vector<1xf32>
    %59 = vector.multi_reduction <add>, %58, %cst_20 [0] : vector<16x1xf32> to vector<1xf32>
    %60 = vector.shape_cast %59 : vector<1xf32> to vector<1x1xf32>
    %61 = vector.broadcast %58 : vector<16x1xf32> to vector<16x128xf32>
    %62 = arith.mulf %61, %1 : vector<16x128xf32>
    %cst_21 = arith.constant dense<0.000000e+00> : vector<128xf32>
    %63 = vector.multi_reduction <add>, %62, %cst_21 [0] : vector<16x128xf32> to vector<128xf32>
    %64 = vector.shape_cast %63 : vector<128xf32> to vector<1x128xf32>
    %65 = vector.broadcast %60 : vector<1x1xf32> to vector<1x128xf32>
    %66 = arith.divf %64, %65 : vector<1x128xf32>
    %c0_22 = arith.constant 0 : index
    %c1 = arith.constant 1 : index
    %c0_23 = arith.constant 0 : index
    %67 = vector.load %arg3[%c0_22, %c1, %c0_23] : memref<1x4x128xf32, #tpu.memory_space<vmem>>, vector<1x1x128xf32>
    %68 = vector.shape_cast %67 : vector<1x1x128xf32> to vector<1x128xf32>
    %69 = vector.shape_cast %66 : vector<1x128xf32> to vector<1x1x128xf32>
    tpu.vector_store %arg3[%c0_22, %c1, %c0_23], %69 {strides = array<i32>} : memref<1x4x128xf32, #tpu.memory_space<vmem>>, vector<1x1x128xf32>,
    %70 = vector.broadcast %66 : vector<1x128xf32> to vector<16x128xf32>
    %71 = arith.subf %1, %70 : vector<16x128xf32>
    %72 = vector.broadcast %58 : vector<16x1xf32> to vector<16x128xf32>
    %73 = arith.mulf %72, %71 : vector<16x128xf32>
    %cst_24 = arith.constant dense<0.000000e+00> : vector<128x128xf32>
    %74 = tpu.matmul %73, %71, %cst_24 {dimension_numbers = #tpu.dot_dimension_numbers<[0], [0], [1], [1], [0, 1, 1, 1], [], []>} : vector<16x128xf32>, vector<16x128xf32>, vector<128x128xf32> -> vector<128x128xf32>
    %cst_25 = arith.constant 1.000000e+00 : f32
    %75 = vector.broadcast %cst_25 : f32 to vector<1x1xf32>
    %76 = arith.subf %60, %75 : vector<1x1xf32>
    %77 = vector.broadcast %76 : vector<1x1xf32> to vector<128x128xf32>
    %78 = arith.divf %74, %77 : vector<128x128xf32>
    %cst_26 = arith.constant 1.000000e+00 : f32
    %79 = vector.broadcast %cst_26 : f32 to vector<1x1xf32>
    %80 = arith.addf %60, %79 : vector<1x1xf32>
    %81 = arith.divf %60, %80 : vector<1x1xf32>
    %82 = vector.broadcast %81 : vector<1x1xf32> to vector<128x128xf32>
    %83 = arith.mulf %82, %78 : vector<128x128xf32>
    %cst_27 = arith.constant 1.000000e+00 : f32
    %84 = vector.broadcast %cst_27 : f32 to vector<1x1xf32>
    %85 = arith.subf %84, %81 : vector<1x1xf32>
    %86 = vector.broadcast %85 : vector<1x1xf32> to vector<128x128xf32>
    %87 = arith.mulf %86, %11 : vector<128x128xf32>
    %88 = arith.addf %83, %87 : vector<128x128xf32>
    %89 = arith.addf %88, %16 : vector<128x128xf32>
    %c0_28 = arith.constant 0 : index
    %c1_29 = arith.constant 1 : index
    %c0_30 = arith.constant 0 : index
    %c0_31 = arith.constant 0 : index
    %90 = vector.load %arg4[%c0_28, %c1_29, %c0_30, %c0_31] : memref<1x4x128x128xf32, #tpu.memory_space<vmem>>, vector<1x1x128x128xf32>
    %91 = vector.shape_cast %90 : vector<1x1x128x128xf32> to vector<128x128xf32>
    %92 = vector.shape_cast %89 : vector<128x128xf32> to vector<1x1x128x128xf32>
    tpu.vector_store %arg4[%c0_28, %c1_29, %c0_30, %c0_31], %92 {strides = array<i32>} : memref<1x4x128x128xf32, #tpu.memory_space<vmem>>, vector<1x1x128x128xf32>,
    %c2_i32 = arith.constant 2 : i32
    %93 = vector.broadcast %c2_i32 : i32 to vector<16x1xi32>
    %94 = arith.cmpi eq, %2, %93 : vector<16x1xi32>
    %95 = arith.extui %94 : vector<16x1xi1> to vector<16x1xi32>
    %96 = arith.sitofp %95 : vector<16x1xi32> to vector<16x1xf32>
    %cst_32 = arith.constant dense<0.000000e+00> : vector<1xf32>
    %97 = vector.multi_reduction <add>, %96, %cst_32 [0] : vector<16x1xf32> to vector<1xf32>
    %98 = vector.shape_cast %97 : vector<1xf32> to vector<1x1xf32>
    %99 = vector.broadcast %96 : vector<16x1xf32> to vector<16x128xf32>
    %100 = arith.mulf %99, %1 : vector<16x128xf32>
    %cst_33 = arith.constant dense<0.000000e+00> : vector<128xf32>
    %101 = vector.multi_reduction <add>, %100, %cst_33 [0] : vector<16x128xf32> to vector<128xf32>
    %102 = vector.shape_cast %101 : vector<128xf32> to vector<1x128xf32>
    %103 = vector.broadcast %98 : vector<1x1xf32> to vector<1x128xf32>
    %104 = arith.divf %102, %103 : vector<1x128xf32>
    %c0_34 = arith.constant 0 : index
    %c2 = arith.constant 2 : index
    %c0_35 = arith.constant 0 : index
    %105 = vector.load %arg3[%c0_34, %c2, %c0_35] : memref<1x4x128xf32, #tpu.memory_space<vmem>>, vector<1x1x128xf32>
    %106 = vector.shape_cast %105 : vector<1x1x128xf32> to vector<1x128xf32>
    %107 = vector.shape_cast %104 : vector<1x128xf32> to vector<1x1x128xf32>
    tpu.vector_store %arg3[%c0_34, %c2, %c0_35], %107 {strides = array<i32>} : memref<1x4x128xf32, #tpu.memory_space<vmem>>, vector<1x1x128xf32>,
    %108 = vector.broadcast %104 : vector<1x128xf32> to vector<16x128xf32>
    %109 = arith.subf %1, %108 : vector<16x128xf32>
    %110 = vector.broadcast %96 : vector<16x1xf32> to vector<16x128xf32>
    %111 = arith.mulf %110, %109 : vector<16x128xf32>
    %cst_36 = arith.constant dense<0.000000e+00> : vector<128x128xf32>
    %112 = tpu.matmul %111, %109, %cst_36 {dimension_numbers = #tpu.dot_dimension_numbers<[0], [0], [1], [1], [0, 1, 1, 1], [], []>} : vector<16x128xf32>, vector<16x128xf32>, vector<128x128xf32> -> vector<128x128xf32>
    %cst_37 = arith.constant 1.000000e+00 : f32
    %113 = vector.broadcast %cst_37 : f32 to vector<1x1xf32>
    %114 = arith.subf %98, %113 : vector<1x1xf32>
    %115 = vector.broadcast %114 : vector<1x1xf32> to vector<128x128xf32>
    %116 = arith.divf %112, %115 : vector<128x128xf32>
    %cst_38 = arith.constant 1.000000e+00 : f32
    %117 = vector.broadcast %cst_38 : f32 to vector<1x1xf32>
    %118 = arith.addf %98, %117 : vector<1x1xf32>
    %119 = arith.divf %98, %118 : vector<1x1xf32>
    %120 = vector.broadcast %119 : vector<1x1xf32> to vector<128x128xf32>
    %121 = arith.mulf %120, %116 : vector<128x128xf32>
    %cst_39 = arith.constant 1.000000e+00 : f32
    %122 = vector.broadcast %cst_39 : f32 to vector<1x1xf32>
    %123 = arith.subf %122, %119 : vector<1x1xf32>
    %124 = vector.broadcast %123 : vector<1x1xf32> to vector<128x128xf32>
    %125 = arith.mulf %124, %11 : vector<128x128xf32>
    %126 = arith.addf %121, %125 : vector<128x128xf32>
    %127 = arith.addf %126, %16 : vector<128x128xf32>
    %c0_40 = arith.constant 0 : index
    %c2_41 = arith.constant 2 : index
    %c0_42 = arith.constant 0 : index
    %c0_43 = arith.constant 0 : index
    %128 = vector.load %arg4[%c0_40, %c2_41, %c0_42, %c0_43] : memref<1x4x128x128xf32, #tpu.memory_space<vmem>>, vector<1x1x128x128xf32>
    %129 = vector.shape_cast %128 : vector<1x1x128x128xf32> to vector<128x128xf32>
    %130 = vector.shape_cast %127 : vector<128x128xf32> to vector<1x1x128x128xf32>
    tpu.vector_store %arg4[%c0_40, %c2_41, %c0_42, %c0_43], %130 {strides = array<i32>} : memref<1x4x128x128xf32, #tpu.memory_space<vmem>>, vector<1x1x128x128xf32>,
    %c3_i32 = arith.constant 3 : i32
    %131 = vector.broadcast %c3_i32 : i32 to vector<16x1xi32>
    %132 = arith.cmpi eq, %2, %131 : vector<16x1xi32>
    %133 = arith.extui %132 : vector<16x1xi1> to vector<16x1xi32>
    %134 = arith.sitofp %133 : vector<16x1xi32> to vector<16x1xf32>
    %cst_44 = arith.constant dense<0.000000e+00> : vector<1xf32>
    %135 = vector.multi_reduction <add>, %134, %cst_44 [0] : vector<16x1xf32> to vector<1xf32>
    %136 = vector.shape_cast %135 : vector<1xf32> to vector<1x1xf32>
    %137 = vector.broadcast %134 : vector<16x1xf32> to vector<16x128xf32>
    %138 = arith.mulf %137, %1 : vector<16x128xf32>
    %cst_45 = arith.constant dense<0.000000e+00> : vector<128xf32>
    %139 = vector.multi_reduction <add>, %138, %cst_45 [0] : vector<16x128xf32> to vector<128xf32>
    %140 = vector.shape_cast %139 : vector<128xf32> to vector<1x128xf32>
    %141 = vector.broadcast %136 : vector<1x1xf32> to vector<1x128xf32>
    %142 = arith.divf %140, %141 : vector<1x128xf32>
    %c0_46 = arith.constant 0 : index
    %c3 = arith.constant 3 : index
    %c0_47 = arith.constant 0 : index
    %143 = vector.load %arg3[%c0_46, %c3, %c0_47] : memref<1x4x128xf32, #tpu.memory_space<vmem>>, vector<1x1x128xf32>
    %144 = vector.shape_cast %143 : vector<1x1x128xf32> to vector<1x128xf32>
    %145 = vector.shape_cast %142 : vector<1x128xf32> to vector<1x1x128xf32>
    tpu.vector_store %arg3[%c0_46, %c3, %c0_47], %145 {strides = array<i32>} : memref<1x4x128xf32, #tpu.memory_space<vmem>>, vector<1x1x128xf32>,
    %146 = vector.broadcast %142 : vector<1x128xf32> to vector<16x128xf32>
    %147 = arith.subf %1, %146 : vector<16x128xf32>
    %148 = vector.broadcast %134 : vector<16x1xf32> to vector<16x128xf32>
    %149 = arith.mulf %148, %147 : vector<16x128xf32>
    %cst_48 = arith.constant dense<0.000000e+00> : vector<128x128xf32>
    %150 = tpu.matmul %149, %147, %cst_48 {dimension_numbers = #tpu.dot_dimension_numbers<[0], [0], [1], [1], [0, 1, 1, 1], [], []>} : vector<16x128xf32>, vector<16x128xf32>, vector<128x128xf32> -> vector<128x128xf32>
    %cst_49 = arith.constant 1.000000e+00 : f32
    %151 = vector.broadcast %cst_49 : f32 to vector<1x1xf32>
    %152 = arith.subf %136, %151 : vector<1x1xf32>
    %153 = vector.broadcast %152 : vector<1x1xf32> to vector<128x128xf32>
    %154 = arith.divf %150, %153 : vector<128x128xf32>
    %cst_50 = arith.constant 1.000000e+00 : f32
    %155 = vector.broadcast %cst_50 : f32 to vector<1x1xf32>
    %156 = arith.addf %136, %155 : vector<1x1xf32>
    %157 = arith.divf %136, %156 : vector<1x1xf32>
    %158 = vector.broadcast %157 : vector<1x1xf32> to vector<128x128xf32>
    %159 = arith.mulf %158, %154 : vector<128x128xf32>
    %cst_51 = arith.constant 1.000000e+00 : f32
    %160 = vector.broadcast %cst_51 : f32 to vector<1x1xf32>
    %161 = arith.subf %160, %157 : vector<1x1xf32>
    %162 = vector.broadcast %161 : vector<1x1xf32> to vector<128x128xf32>
    %163 = arith.mulf %162, %11 : vector<128x128xf32>
    %164 = arith.addf %159, %163 : vector<128x128xf32>
    %165 = arith.addf %164, %16 : vector<128x128xf32>
    %c0_52 = arith.constant 0 : index
    %c3_53 = arith.constant 3 : index
    %c0_54 = arith.constant 0 : index
    %c0_55 = arith.constant 0 : index
    %166 = vector.load %arg4[%c0_52, %c3_53, %c0_54, %c0_55] : memref<1x4x128x128xf32, #tpu.memory_space<vmem>>, vector<1x1x128x128xf32>
    %167 = vector.shape_cast %166 : vector<1x1x128x128xf32> to vector<128x128xf32>
    %168 = vector.shape_cast %165 : vector<128x128xf32> to vector<1x1x128x128xf32>
    tpu.vector_store %arg4[%c0_52, %c3_53, %c0_54, %c0_55], %168 {strides = array<i32>} : memref<1x4x128x128xf32, #tpu.memory_space<vmem>>, vector<1x1x128x128xf32>,
    return
  }
  func.func @transform_0(%arg0: i32) -> (i32, i32, i32) {
    %c0_i32 = arith.constant 0 : i32
    %c0_i32_0 = arith.constant 0 : i32
    %c0_i32_1 = arith.constant 0 : i32
    return %arg0, %c0_i32, %c0_i32_0 : i32, i32, i32
  }
  func.func @transform_1(%arg0: i32) -> (i32, i32) {
    %c0_i32 = arith.constant 0 : i32
    %c0_i32_0 = arith.constant 0 : i32
    %c0_i32_1 = arith.constant 0 : i32
    return %c0_i32, %c0_i32_0 : i32, i32
  }
  func.func @transform_2(%arg0: i32) -> (i32, i32, i32) {
    %c0_i32 = arith.constant 0 : i32
    %c0_i32_0 = arith.constant 0 : i32
    %c0_i32_1 = arith.constant 0 : i32
    return %arg0, %c0_i32, %c0_i32_0 : i32, i32, i32
  }
  func.func @transform_3(%arg0: i32) -> (i32, i32, i32, i32) {
    %c0_i32 = arith.constant 0 : i32
    %c0_i32_0 = arith.constant 0 : i32
    %c0_i32_1 = arith.constant 0 : i32
    %c0_i32_2 = arith.constant 0 : i32
    return %arg0, %c0_i32, %c0_i32_0, %c0_i32_1 : i32, i32, i32, i32
  }
}

</mosaic_0001>

<bundles_post_ra>
// kernel: tpu_custom_call.1
= control target key start
LH: loop header
LB: loop body
LE: loop exit
PB: predicated region body
PF: predicated region fallthrough
CT: control target
= control target key end

     0   :  { %9 = vsyncpa [#allocation3], 0  ;;  %s3887_s0 = inlined_call_operand.hbm [shape: f32[2,16,128], index: 0, kind: input, shape index: {}]   ;;  %s3888_s1 = inlined_call_operand.vmem [shape: s32[16,1], index: 1, kind: input, shape index: {}]   ;;  %s3889_s2 = inlined_call_operand.hbm [shape: f32[2,4,128], index: 2, kind: output, shape index: {0}]   ;;  %s3890_s3 = inlined_call_operand.hbm [shape: f32[2,4,128,128], index: 3, kind: output, shape index: {1}]  }
   0x1   :  { %11 = vsyncpa [#allocation3 + $0x1], 0 }
   0x2   :  { %12 = vsyncpa [#allocation4], 0 }
   0x3   :  { %14 = vsyncpa [#allocation4 + $0x1], 0 }
   0x4   :  { %15 = vsyncpa [#allocation7], 0 }
   0x5   :  { %17 = vsyncpa [#allocation7 + $0x1], 0  ;;  %s2906_s12 = smov 0   ;;  %s2908_s13 = smov 0  }
   0x6   :  { %s2910_s14 = smov 0   ;;  %s2912_s15 = smov 0  }
   0x7 LB: > { %s2927_s16 = sadd.s32 4294967295, %s2875_s15   ;;  %s2217_s17 = sadd.s32 4294967294, %s2875_s15   ;;  %s2875_s15 = sphi %s2912_s15, %s3903_s15   ;;  %s2871_s14 = sphi %s2910_s14, %s3902_s14   ;;  %s2867_s13 = sphi %s2908_s13, %s3901_s13   ;;  %s2863_s12 = sphi %s2906_s12, %s3900_s12  }
   0x8   : > { %s2931_s18 = sadd.s32 1, %s2875_s15   ;;  %s30_s19 = sadd.s32 1, %s2871_s14 }
   0x9   : > { %s27_s20 = ssub.s32 %s2875_s15, %s2931_s18  ;;  %p37_p0 = scmp.ne.s32.totalorder %s2871_s14, %s2867_s13 }
   0xa   : > { %p28_p1 = scmp.eq.s32.totalorder %s27_s20, 0  ;;  %p38_p2 = scmp.eq.s32.totalorder %s2875_s15, 0 }
   0xb   : > { %p43_p3 = scmp.ne.s32.totalorder %s2867_s13, %s2863_s12  ;;  %p44_p4 = scmp.eq.s32.totalorder %s2927_s16, 0 }
   0xc   : > { %s2943_s21 = scalar_select %p28_p1, %s2871_s14, %s30_s19  }
   0xd   : > { %p2945_p5 = por %p38_p2, %p37_p0  ;;  %p2949_p6 = por %p44_p4, %p43_p3 }
   0xe   : > { %p88_p7 = scmp.eq.s32.totalorder %s2927_s16, 1  ;;  %p94_p8 = scmp.eq.s32.totalorder %s2217_s17, 1 }
   0xf   : > { %p2661_p10 = scmp.lt.s32.totalorder %s2875_s15, 2  ;;  %s143_s26 = sand.u32 1, %s2871_s14  }
  0x10   : > { %p2956_p11 = por %p88_p7, %p37_p0  ;;  %p2960_p12 = por %p94_p8, %p43_p3 }
  0x11   : > { %s2390_s27 = sshll.u32 %s2875_s15, 8  ;;  %s2220_s28 = sshll.u32 %s143_s26, 4 }
  0x12   : > { %s3894_s24 = scalar_select %p2956_p11, 1, 0 }
  0x13   : > { %s3895_s25 = scalar_select %p2960_p12, 1, 0 }
  0x14   : > { %s2969_s4 = scalar_lea.hbm %s3887_s0, %s2390_s27  ;;  %s147_s5 = scalar_lea.vmem [#allocation2], %s2220_s28 }
  0x15   : > { %s154_s6 = sshll.u32 %s147_s5, 4  ;;  %p2973_p13 = pnand %p2661_p10, %p2945_p5  ;;  %s2977_s6 = int_to_ptr.vmem [resolvable:$true] %s154_s6 }
  0x16   : > { %s2979_s8 = scalar_lea.sflag [#allocation3], %s143_s26  ;;  %s2747_s9 = scalar_lea.hbm %s2969_s4, 256 }
  0x17   : > { %p2748_p0 = scmp.ne.s32.totalorder %s2969_s4, %s2747_s9  ;;  %p2749_p1 = pneg %p2973_p13 }
  0x18   : > { %s2752_s17 = scalar_lea.hbm %s3887_s0, 512  ;;  %p2753_p4 = scmp.lt.u32.totalorder %s2969_s4, %s3887_s0 }
  0x19   : > { %p2750_p2 = pnand %p2749_p1, %p2748_p0  ;;  %p2754_p5 = scmp.lt.u32.totalorder %s2752_s17, %s2747_s9 }
  0x1a   : > { %p2756_p8 = scmp.lt.u32.totalorder %s2747_s9, %s2969_s4 }
  0x1b   : > { %p2751_p3 = pneg %p2750_p2  ;;  %p2755_p7 = por %p2754_p5, %p2753_p4 }
  0x1d   : > { %p2757_p10 = por %p2756_p8, %p2755_p7 }
  0x1f   : > { %p2758_p9 = pnand %p2757_p10, %p2751_p3 }
  0x21   : > { %2761 = shalt.err (!%p2758_p9)
}
  0x22   : > { %s2762_s22 = scalar_lea.vmem %s2977_s6, 256  ;;  %s2877_s26 = smov [#allocation2]  }
  0x23   : > { %p2763_p0 = scmp.ne.s32.totalorder %s2977_s6, %s2762_s22  ;;  %s2767_s27 = sshll.u32 %s2877_s26, 4  ;;  %s2768_s27 = int_to_ptr.vmem [resolvable:$false] %s2767_s27 }
  0x24   : > { %s2769_s28 = scalar_lea.vmem %s2768_s27, 512  ;;  %p2770_p11 = scmp.lt.s32.totalorder %s2977_s6, %s2768_s27 }
  0x25   : > { %p2765_p2 = pnand %p2763_p0, %p2749_p1  ;;  %p2771_p4 = scmp.lt.s32.totalorder %s2769_s28, %s2762_s22 }
  0x27   : > { %p2766_p12 = pneg %p2765_p2  ;;  %p2772_p5 = por %p2771_p4, %p2770_p11 }
  0x29   : > { %p2773_p7 = pnand %p2772_p5, %p2766_p12 }
  0x2b   : > { %2776 = shalt.err (!%p2773_p7)
}
  0x2c   : > { %s2878_s29 = smov 128   ;;  %s2879_s30 = smov 8  }
  0x2d   : > { %2653 = dma.hbm_to_vmem [thread:$0]  (!%p2973_p13), %s2969_s4, 256, %s2977_s6, %s2979_s8, %s2878_s29, %s2878_s29, %s2879_s30  }
  0x2e   : > { %p2223_p9 = scmp.ge.s32.totalorder %s2875_s15, 1  ;;  %p162_p1 = scmp.lt.s32.totalorder %s2875_s15, 3 }
  0x30   : > { %p163_p3 = pnand %p2223_p9, %p162_p1 }
  0x31   : > { %s3010_s5 = sand.u32 (!%p163_p3), 1, %s2867_s13  }
  0x32   : > { %166 = sbr.rel (%p163_p3) target bundleno = 715 (0x2cb), region = 28  ;;  %s2224_s9 = sshll.u32 (!%p163_p3), %s3010_s5, 4 }
  0x33   : > { %s169_s10 = scalar_lea.sflag (!%p163_p3), [#allocation3], %s3010_s5  ;;  %s3014_s11 = scalar_lea.vmem (!%p163_p3), [#allocation2], %s2224_s9 }
  0x39   : > { %2850 = dma.done.wait (%p2949_p6), %s169_s10, 256  }
  0x3a   : > { %2852 = vsyncadd (%p2949_p6), %s169_s10, 4294967040  ;;  %v2880_v0 = vmov 0   ;;  %v202_v1 = vld [vmem:[%s3888_s1] sm:$0xff]  ;;  %v203_v2 = vld [vmem:[%s3888_s1 + $0x8] sm:$0xff]  ;;  %vm530_vm0 = vcmask 7168   ;;  %v2881_v3 = vmov 0.0  }
  0x3b   : > { %2701 = vset.pattern.permute.xlu0 %v2880_v0  ;;  %2712 = vset.pattern.permute.xlu1 %v2880_v0  ;;  %vm524_vm1 = vcmp.eq.s32.totalorder %v202_v1, 0  ;;  %vm525_vm2 = vcmp.eq.s32.totalorder %v203_v2, 0  ;;  %vm913_vm3 = vcmp.eq.s32.totalorder %v202_v1, 1  ;;  %vm914_vm4 = vcmp.eq.s32.totalorder %v203_v2, 1  ;;  %v3038_v20 = vld [vmem:[%s3014_s11] sm:$0xff]  ;;  %v3041_v21 = vld [vmem:[%s3014_s11 + $0x8] sm:$0xff] }
  0x3c   : > { %v2259_v4 = vsel %vm524_vm1, 1.0, %v2881_v3  ;;  %v2260_v5 = vsel %vm525_vm2, 1.0, %v2881_v3  ;;  %v2278_v6 = vsel %vm913_vm3, 1.0, %v2881_v3  ;;  %v2279_v7 = vsel %vm914_vm4, 1.0, %v2881_v3  ;;  %s2225_s23 = sshll.u32 %s3010_s5, 2  ;;  %s2226_s19 = sshll.u32 %s3010_s5, 9 }
  0x3d   : > { %v532_v8 = vsel %vm530_vm0, %v2260_v5, 0.0  ;;  %v2702_v9 = vpack.i.bf16 %v2260_v5, %v2259_v4  ;;  %v531_v10 = vsel %vm530_vm0, %v2259_v4, 0.0  ;;  %v920_v11 = vsel %vm530_vm0, %v2279_v7, 0.0  ;;  %s3104_s17 = scalar_lea.vmem [#allocation5], %s2225_s23  ;;  %s2385_s20 = sshll.u32 %s2927_s16, 6 }
  0x3e   : > { %v533_v12 = vadd.f32 %v532_v8, %v531_v10  ;;  %v2707_v13 = vpack.i.bf16 %v2279_v7, %v2278_v6  ;;  %v919_v14 = vsel %vm530_vm0, %v2278_v6, 0.0  ;;  %vm1302_vm5 = vcmp.eq.s32.totalorder %v202_v1, 2  ;;  %s3331_s27 = scalar_lea.hbm %s3889_s2, %s2385_s20  ;;  %s2099_s28 = sshll.u32 %s3104_s17, 4  ;;  %s3342_s28 = int_to_ptr.vmem [resolvable:$true] %s2099_s28 }
  0x3f   : > { %2703 = vperm.xlu0 %2701, %v2702_v9   ;;  %v921_v15 = vadd.f32 %v920_v11, %v919_v14  ;;  %vm1303_vm6 = vcmp.eq.s32.totalorder %v203_v2, 2  ;;  %v2313_v16 = vsel %vm1302_vm5, 1.0, %v2881_v3  ;;  %vm1691_vm7 = vcmp.eq.s32.totalorder %v202_v1, 3  ;;  %s3334_s29 = scalar_lea.vmem [#allocation6], %s2226_s19  ;;  %s2081_s30 = scalar_lea.sflag [#allocation4], %s3010_s5 }
  0x40   : > { %v534_v17 = vrot.slane %v533_v12, 4  ;;  %v2314_v18 = vsel %vm1303_vm6, 1.0, %v2881_v3  ;;  %v1308_v19 = vsel %vm530_vm0, %v2313_v16, 0.0  ;;  %vm1692_vm8 = vcmp.eq.s32.totalorder %v203_v2, 3  ;;  %s2777_s9 = scalar_lea.vmem %s3342_s28, 64  ;;  %p3897_p11 = scmp.ne.s32.totalorder %s3894_s24, 0 }
  0x41   : > { %v922_v22 = vrot.slane %v921_v15, 4  ;;  %v1309_v23 = vsel %vm530_vm0, %v2314_v18, 0.0  ;;  %v2348_v24 = vsel %vm1691_vm7, 1.0, %v2881_v3  ;;  %v2349_v27 = vsel %vm1692_vm8, 1.0, %v2881_v3  ;;  %p2778_p6 = scmp.ne.s32.totalorder %s3342_s28, %s2777_s9  ;;  %s2882_s10 = smov [#allocation5]  }
  0x42   : > { %v535_v25 = vadd.f32 %v534_v17, %v533_v12  ;;  %v1310_v26 = vadd.f32 %v1309_v23, %v1308_v19  ;;  %v1697_v28 = vsel %vm530_vm0, %v2348_v24, 0.0  ;;  %v2713_v30 = vpack.i.bf16 %v2314_v18, %v2313_v16  ;;  %s2781_s11 = sshll.u32 %s2882_s10, 4  ;;  %s2782_s11 = int_to_ptr.vmem [resolvable:$false] %s2781_s11 }
  0x43   : > { %v923_v29 = vadd.f32 %v922_v22, %v921_v15  ;;  %2708 = vperm.xlu0 %2701, %v2707_v13   ;;  %v1698_v31 = vsel %vm530_vm0, %v2349_v27, 0.0  ;;  %v204_v32 = vadd.f32 %v3041_v21, %v3038_v20  ;;  %v2718_v58 = vpack.i.bf16 %v2349_v27, %v2348_v24  ;;  %p2779_p12 = pnand %p2778_p6, %p3897_p11  ;;  %s2783_s4 = scalar_lea.vmem %s2782_s11, 128 }
  0x44   : > { %v536_v33 = vrot.slane %v535_v25, 2  ;;  %v1311_v34 = vrot.slane %v1310_v26, 4  ;;  %v1699_v35 = vadd.f32 %v1698_v31, %v1697_v28  ;;  %vm247_vm9 = vcmask 130048   ;;  %p2784_p8 = scmp.lt.s32.totalorder %s3342_s28, %s2782_s11  ;;  %p2785_p10 = scmp.lt.s32.totalorder %s2783_s4, %s2777_s9 }
  0x45   : > { %v924_v36 = vrot.slane %v923_v29, 2  ;;  %v205_v37 = vrot.slane %v204_v32, 4  ;;  %p2780_p13 = pneg %p2779_p12 }
  0x46   : > { %v537_v38 = vadd.f32 %v536_v33, %v535_v25  ;;  %v1312_v39 = vadd.f32 %v1311_v34, %v1310_v26  ;;  %v1700_v40 = vrot.slane %v1699_v35, 4  ;;  %p2786_p0 = por %p2785_p10, %p2784_p8 }
  0x47   : > { %2714 = vperm.xlu0 %2701, %v2713_v30   ;;  %v925_v41 = vadd.f32 %v924_v36, %v923_v29  ;;  %v206_v42 = vadd.f32 %v205_v37, %v204_v32 }
  0x48   : > { %v1313_v43 = vrot.slane %v1312_v39, 2  ;;  %v538_v44 = vrot.slane %v537_v38, 1  ;;  %v1701_v45 = vadd.f32 %v1700_v40, %v1699_v35  ;;  %p2787_p2 = pnand %p2786_p0, %p2780_p13 }
  0x49   : > { %v926_v46 = vrot.slane %v925_v41, 1  ;;  %v207_v47 = vrot.slane %v206_v42, 2 }
  0x4a   : > { %v1314_v48 = vadd.f32 %v1313_v43, %v1312_v39  ;;  %v3050_v49 = vadd.f32 %v538_v44, %v537_v38  ;;  %v1702_v50 = vrot.slane %v1701_v45, 2 }
  0x4b   : > { %v208_v51 = vadd.f32 %v207_v47, %v206_v42  ;;  %v3053_v53 = vadd.f32 %v926_v46, %v925_v41 }
  0x4c   : > { %v1315_v52 = vrot.slane %v1314_v48, 1  ;;  %561 = vperm.xlu1 %2712, %v3050_v49   ;;  %v1703_v54 = vadd.f32 %v1702_v50, %v1701_v45 }
  0x4d   : > { %v209_v55 = vrot.slane %v208_v51, 1 }
  0x4e   : > { %v3055_v56 = vadd.f32 %v1315_v52, %v1314_v48  ;;  %v1704_v59 = vrot.slane %v1703_v54, 1 }
  0x4f   : > { %v210_v57 = vadd.f32 %v209_v55, %v208_v51 }
  0x50   : > { %1338 = vperm.xlu0 %2701, %v3055_v56   ;;  %949 = vperm.xlu1 %2712, %v3053_v53   ;;  %v3061_v63 = vadd.f32 %v1704_v59, %v1703_v54 }
  0x51   : > { %v212_v60 = vmul.f32 0.0625, %v210_v57 }
  0x53   : > { %v213_v61 = vsub.f32 %v3038_v20, %v212_v60  ;;  %v214_v62 = vsub.f32 %v3041_v21, %v212_v60 }
  0x54   : > { %2719 = vperm.xlu1 %2712, %v2718_v58  }
  0x55   : > { %v2622_v0 = vpack.c.bf16 %v214_v62, %v213_v61 }
  0x57   : > { %2642 = vmatprep.subr.bf16.mxu1 %v2622_v0  ;;  %2623 = vmatprep.subr.bf16.mxu0 %v2622_v0 }
  0x58   : > { %1727 = vperm.xlu1 %2712, %v3061_v63   ;;  %2643 = vmatpush3.bf16.msra.mxu1 %v2622_v0 }
  0x59   : > { %2625 = vmatpush3.bf16.msra.mxu0 %v2622_v0 }
  0x6e   : > { %215 = vxpose.xlu0.b32.start [1/2] (short) %v213_v61, 128 }
  0x72   : > { %216 = vxpose.xlu0.b32.end [2/2] (short) %v214_v62, 128 }
  0xbe   : > { %v3064_v1 = vpop.permute.xlu0 %2703 }
  0xbf   : > { %v2706_v2 = vunpack.i.h.bf16 %v3064_v1  ;;  %v2705_v4 = vunpack.i.l.bf16 %v3064_v1 }
  0xc1   : > { %v550_v5 = vmul.f32 %v2705_v4, %v3038_v20  ;;  %v551_v6 = vmul.f32 %v2706_v2, %v3041_v21 }
  0xc2   : > { %v3072_v7 = vpop.permute.xlu0 %2708 }
  0xc3   : > { %v552_v8 = vadd.f32 %v551_v6, %v550_v5  ;;  %v2711_v9 = vunpack.i.h.bf16 %v3072_v7  ;;  %v2710_v10 = vunpack.i.l.bf16 %v3072_v7 }
  0xc5   : > { %v553_v11 = vrot.slane %v552_v8, 4  ;;  %v938_v12 = vmul.f32 %v2710_v10, %v3038_v20  ;;  %v939_v13 = vmul.f32 %v2711_v9, %v3041_v21 }
  0xc6   : > { %v3082_v14 = vpop.permute.xlu0 %2714 }
  0xc7   : > { %v554_v15 = vadd.f32 %v553_v11, %v552_v8  ;;  %v940_v16 = vadd.f32 %v939_v13, %v938_v12  ;;  %v2717_v17 = vunpack.i.h.bf16 %v3082_v14  ;;  %v2716_v18 = vunpack.i.l.bf16 %v3082_v14 }
  0xc9   : > { %v555_v19 = vrot.slane %v554_v15, 2  ;;  %v941_v22 = vrot.slane %v940_v16, 4  ;;  %v1327_v23 = vmul.f32 %v2716_v18, %v3038_v20  ;;  %v1328_v24 = vmul.f32 %v2717_v17, %v3041_v21 }
  0xcb   : > { %v942_v25 = vadd.f32 %v941_v22, %v940_v16  ;;  %v1329_v26 = vadd.f32 %v1328_v24, %v1327_v23  ;;  %v562_v27 = vpop.permute.xlu1 %561  ;;  %v556_v28 = vadd.f32 %v555_v19, %v554_v15 }
  0xcc   : > { %2723 = vrcp.f32 %v562_v27 }
  0xcd   : > { %v1330_v29 = vrot.slane %v1329_v26, 4  ;;  %v943_v30 = vrot.slane %v942_v25, 2  ;;  %v557_v34 = vrot.slane %v556_v28, 1 }
  0xcf   : > { %v1331_v31 = vadd.f32 %v1330_v29, %v1329_v26  ;;  %v1339_v32 = vpop.permute.xlu0 %1338  ;;  %v950_v33 = vpop.permute.xlu1 %949  ;;  %v944_v36 = vadd.f32 %v943_v30, %v942_v25  ;;  %v558_v41 = vadd.f32 %v557_v34, %v556_v28 }
  0xd0   : > { %2725 = vrcp.f32 %v1339_v32 }
  0xd1   : > { %v1332_v35 = vrot.slane %v1331_v31, 2  ;;  %2727 = vrcp.f32 %v950_v33  ;;  %v945_v44 = vrot.slane %v944_v36, 1 }
  0xd3   : > { %v1333_v37 = vadd.f32 %v1332_v35, %v1331_v31  ;;  %v3092_v38 = vpop.permute.xlu1 %2719  ;;  %v946_v57 = vadd.f32 %v945_v44, %v944_v36 }
  0xd4   : > { %v2722_v39 = vunpack.i.h.bf16 %v3092_v38  ;;  %v2721_v40 = vunpack.i.l.bf16 %v3092_v38 }
  0xd5   : > { %v1334_v42 = vrot.slane %v1333_v37, 1 }
  0xd6   : > { %v2724_v43 = vpop.eup %2723  ;;  %v1716_v45 = vmul.f32 %v2721_v40, %v3038_v20  ;;  %v1717_v46 = vmul.f32 %v2722_v39, %v3041_v21 }
  0xd7   : > { %v565_v47 = vmul.f32 %v2724_v43, %v558_v41  ;;  %v1335_v48 = vadd.f32 %v1334_v42, %v1333_v37  ;;  %v1728_v51 = vpop.permute.xlu1 %1727 }
  0xd8   : > { %v1718_v50 = vadd.f32 %v1717_v46, %v1716_v45  ;;  %2729 = vrcp.f32 %v1728_v51 }
  0xd9   : > { %v567_v52 = vsub.f32 %v3038_v20, %v565_v47  ;;  %566 = vst [vmem:[%s3104_s17] sm:$0x1] %v565_v47  ;;  %v568_v54 = vsub.f32 %v3041_v21, %v565_v47 }
  0xda   : > { %v2726_v55 = vpop.eup %2725  ;;  %v1719_v58 = vrot.slane %v1718_v50, 4 }
  0xdb   : > { %v2728_v59 = vpop.eup %2727  ;;  %v569_v60 = vmul.f32 %v2705_v4, %v567_v52  ;;  %v2626_v61 = vpack.c.bf16 %v568_v54, %v567_v52  ;;  %v1342_v62 = vmul.f32 %v2726_v55, %v1335_v48  ;;  %v570_v12 = vmul.f32 %v2706_v2, %v568_v54 }
  0xdc   : > { %v1720_v0 = vadd.f32 %v1719_v58, %v1718_v50  ;;  %v953_v5 = vmul.f32 %v2728_v59, %v946_v57  ;;  %v1207_v50 = vadd.f32 1.0, %v3053_v53  ;;  %v2277_v55 = vadd.f32 -1.0, %v3050_v49 }
  0xdd   : > { %571 = vxpose.xlu1.b32.start [1/2] (short) %v569_v60, 128  ;;  %2627 = vmatprep.subr.bf16.mxu1 %v2626_v61  ;;  %1343 = vst [vmem:[%s3104_s17 + $0x2] sm:$0x1] %v1342_v62  ;;  %v1344_v32 = vsub.f32 %v3038_v20, %v1342_v62  ;;  %v1345_v33 = vsub.f32 %v3041_v21, %v1342_v62 }
  0xde   : > { %v1721_v6 = vrot.slane %v1720_v0, 2  ;;  %954 = vst [vmem:[%s3104_s17 + $0x1] sm:$0x1] %v953_v5  ;;  %v955_v8 = vsub.f32 %v3038_v20, %v953_v5  ;;  %v956_v11 = vsub.f32 %v3041_v21, %v953_v5  ;;  %v2296_v5 = vadd.f32 -1.0, %v3053_v53 }
  0xdf   : > { %v2634_v35 = vpack.c.bf16 %v1345_v33, %v1344_v32  ;;  %v1346_v37 = vmul.f32 %v2716_v18, %v1344_v32 }
  0xe0   : > { %v1722_v13 = vadd.f32 %v1721_v6, %v1720_v0  ;;  %v957_v4 = vmul.f32 %v2710_v10, %v955_v8  ;;  %v2630_v15 = vpack.c.bf16 %v956_v11, %v955_v8  ;;  %v958_v22 = vmul.f32 %v2711_v9, %v956_v11 }
  0xe1   : > { %572 = vxpose.xlu1.b32.end [2/2] (short) %v570_v12, 128  ;;  %v1596_v0 = vadd.f32 1.0, %v3055_v56 }
  0xe2   : > { %v1723_v16 = vrot.slane %v1722_v13, 1  ;;  %959 = vxpose.xlu0.b32.start [1/2] (short) %v957_v4, 128  ;;  %2631 = vmatprep.subr.bf16.mxu0 %v2630_v15  ;;  %v2730_v23 = vpop.eup %2729 }
  0xe4   : > { %v1724_v19 = vadd.f32 %v1723_v16, %v1722_v13 }
  0xe6   : > { %960 = vxpose.xlu0.b32.end [2/2] (short) %v958_v22, 128  ;;  %v1731_v24 = vmul.f32 %v2730_v23, %v1724_v19  ;;  %v1985_v19 = vadd.f32 1.0, %v3061_v63 }
  0xe8   : > { %1732 = vst [vmem:[%s3104_s17 + $0x3] sm:$0x1] %v1731_v24  ;;  %v1733_v2 = vsub.f32 %v3038_v20, %v1731_v24  ;;  %v1734_v10 = vsub.f32 %v3041_v21, %v1731_v24  ;;  %v1347_v20 = vmul.f32 %v2717_v17, %v1345_v33 }
  0xea   : > { %v2638_v26 = vpack.c.bf16 %v1734_v10, %v1733_v2  ;;  %v1735_v21 = vmul.f32 %v2721_v40, %v1733_v2  ;;  %v1736_v43 = vmul.f32 %v2722_v39, %v1734_v10  ;;  %v819_v40 = vadd.f32 1.0, %v3050_v49 }
  0xec   : > { %2731 = vrcp.f32 %v819_v40 }
  0xed   : > { %2733 = vrcp.f32 %v1207_v50 }
  0xee   : > { %v231_v1 = vpop.trf.xlu0  ;;  %2735 = vrcp.f32 %v1596_v0 }
  0xef   : > { %2486 = vmatprep.mubr.msk.f32.mxu0 %vm247_vm9, %v231_v1  ;;  %2737 = vrcp.f32 %v1985_v19 }
  0xf2   : > { %v232_v25 = vpop.trf.xlu0 }
  0xf3   : > { %2487 = vmatmul.mubr.msk.f32.vlgmr.msra.gmra.mrb[0].mxu0 %vm247_vm9, %v232_v25 }
  0xf4   : > { %2633 = vmatpush3.bf16.msra.mxu0 %v2630_v15 }
  0xf5   : > { %2639 = vmatprep.subr.bf16.mxu0 %v2638_v26 }
  0xf6   : > { %v233_v7 = vpop.trf.xlu0  ;;  %v2732_v51 = vpop.eup %2731 }
  0xf7   : > { %2489 = vmatprep.mubr.msk.f32.mxu0 %vm247_vm9, %v233_v7  ;;  %v821_v57 = vmul.f32 %v2732_v51, %v3050_v49  ;;  %v2734_v49 = vpop.eup %2733 }
  0xf8   : > { %v1209_v11 = vmul.f32 %v2734_v49, %v3053_v53  ;;  %v2331_v53 = vadd.f32 -1.0, %v3055_v56  ;;  %v2736_v22 = vpop.eup %2735 }
  0xf9   : > { %v843_v60 = vsub.f32 1.0, %v821_v57  ;;  %v1598_v1 = vmul.f32 %v2736_v22, %v3055_v56 }
  0xfa   : > { %v234_v9 = vpop.trf.xlu0  ;;  %v1231_v4 = vsub.f32 1.0, %v1209_v11 }
  0xfb   : > { %2490 = vmatmul.mubr.msk.f32.gmra.mrb[2].mxu0 %vm247_vm9, %v234_v9  ;;  %v1620_v25 = vsub.f32 1.0, %v1598_v1  ;;  %v2366_v9 = vadd.f32 -1.0, %v3061_v63 }
  0xfe   : > { %v235_v27 = vpop.trf.xlu0 }
  0xff   : > { %2492 = vmatprep.mubr.msk.f32.mxu0 %vm247_vm9, %v235_v27  ;;  %v2738_v27 = vpop.eup %2737 }
 0x102   : > { %v236_v28 = vpop.trf.xlu0 }
 0x103   : > { %2493 = vmatmul.mubr.msk.f32.gmra.mrb[4].mxu0 %vm247_vm9, %v236_v28 }
 0x106   : > { %v237_v29 = vpop.trf.xlu0 }
 0x107   : > { %2495 = vmatprep.mubr.msk.f32.mxu0 %vm247_vm9, %v237_v29  ;;  %v1987_v29 = vmul.f32 %v2738_v27, %v3061_v63 }
 0x109   : > { %v2009_v32 = vsub.f32 1.0, %v1987_v29 }
 0x10a   : > { %v238_v30 = vpop.trf.xlu0 }
 0x10b   : > { %2496 = vmatmul.mubr.msk.f32.gmra.mrb[6].mxu0 %vm247_vm9, %v238_v30 }
 0x10e   : > { %v239_v31 = vpop.trf.xlu0 }
 0x10f   : > { %2498 = vmatprep.mubr.msk.f32.mxu1 %vm247_vm9, %v239_v31 }
 0x112   : > { %v240_v34 = vpop.trf.xlu0 }
 0x113   : > { %2499 = vmatmul.mubr.msk.f32.vlgmr.msra.gmra.mrb[0].mxu1 %vm247_vm9, %v240_v34 }
 0x114   : > { %2629 = vmatpush3.bf16.msra.mxu1 %v2626_v61 }
 0x115   : > { %2635 = vmatprep.subr.bf16.mxu1 %v2634_v35 }
 0x116   : > { %v241_v36 = vpop.trf.xlu0 }
 0x117   : > { %2501 = vmatprep.mubr.msk.f32.mxu1 %vm247_vm9, %v241_v36 }
 0x11a   : > { %v242_v41 = vpop.trf.xlu0  ;;  %1348 = vxpose.xlu1.b32.start [1/2] (short) %v1346_v37, 128 }
 0x11b   : > { %2502 = vmatmul.mubr.msk.f32.gmra.mrb[2].mxu1 %vm247_vm9, %v242_v41 }
 0x11e   : > { %v243_v42 = vpop.trf.xlu0  ;;  %1349 = vxpose.xlu1.b32.end [2/2] (short) %v1347_v20, 128 }
 0x11f   : > { %1737 = vxpose.xlu0.b32.start [1/2] (short) %v1735_v21, 128  ;;  %2504 = vmatprep.mubr.msk.f32.mxu1 %vm247_vm9, %v243_v42 }
 0x122   : > { %v244_v44 = vpop.trf.xlu0 }
 0x123   : > { %2505 = vmatmul.mubr.msk.f32.gmra.mrb[4].mxu1 %vm247_vm9, %v244_v44  ;;  %1738 = vxpose.xlu0.b32.end [2/2] (short) %v1736_v43, 128 }
 0x126   : > { %v245_v18 = vpop.trf.xlu0 }
 0x127   : > { %2507 = vmatprep.mubr.msk.f32.mxu1 %vm247_vm9, %v245_v18 }
 0x12a   : > { %v246_v14 = vpop.trf.xlu0 }
 0x12b   : > { %2508 = vmatmul.mubr.msk.f32.gmra.mrb[6].mxu1 %vm247_vm9, %v246_v14 }
 0x15d   : > { %v587_v17 = vpop.trf.xlu1 }
 0x15e   : > { %2514 = vmatprep.mubr.msk.f32.mxu1 %vm247_vm9, %v587_v17 }
 0x161   : > { %v588_v45 = vpop.trf.xlu1 }
 0x162   : > { %v975_v46 = vpop.trf.xlu0  ;;  %2515 = vmatmul.mubr.msk.f32.vlgmr.msra.gmra.mrb[8].mxu1 %vm247_vm9, %v588_v45 }
 0x163   : > { %2542 = vmatprep.mubr.msk.f32.mxu0 %vm247_vm9, %v975_v46  ;;  %2637 = vmatpush3.bf16.msra.mxu1 %v2634_v35 }
 0x165   : > { %v589_v38 = vpop.trf.xlu1 }
 0x166   : > { %v976_v39 = vpop.trf.xlu0  ;;  %2517 = vmatprep.mubr.msk.f32.mxu1 %vm247_vm9, %v589_v38 }
 0x167   : > { %2543 = vmatmul.mubr.msk.f32.vlgmr.msra.gmra.mrb[8].mxu0 %vm247_vm9, %v976_v39 }
 0x168   : > { %2641 = vmatpush3.bf16.msra.mxu0 %v2638_v26 }
 0x169   : > { %v590_v47 = vpop.trf.xlu1 }
 0x16a   : > { %v977_v48 = vpop.trf.xlu0  ;;  %2518 = vmatmul.mubr.msk.f32.gmra.mrb[10].mxu1 %vm247_vm9, %v590_v47 }
 0x16b   : > { %2545 = vmatprep.mubr.msk.f32.mxu0 %vm247_vm9, %v977_v48 }
 0x16d   : > { %v591_v52 = vpop.trf.xlu1 }
 0x16e   : > { %v978_v54 = vpop.trf.xlu0  ;;  %2520 = vmatprep.mubr.msk.f32.mxu1 %vm247_vm9, %v591_v52 }
 0x16f   : > { %2546 = vmatmul.mubr.msk.f32.gmra.mrb[10].mxu0 %vm247_vm9, %v978_v54 }
 0x171   : > { %v592_v58 = vpop.trf.xlu1 }
 0x172   : > { %v979_v59 = vpop.trf.xlu0  ;;  %2521 = vmatmul.mubr.msk.f32.gmra.mrb[12].mxu1 %vm247_vm9, %v592_v58 }
 0x173   : > { %2548 = vmatprep.mubr.msk.f32.mxu0 %vm247_vm9, %v979_v59 }
 0x174   : > { %799 = vperm.xlu1 %2712, %v2277_v55  }
 0x175   : > { %v593_v61 = vpop.trf.xlu1 }
 0x176   : > { %v980_v62 = vpop.trf.xlu0  ;;  %2523 = vmatprep.mubr.msk.f32.mxu1 %vm247_vm9, %v593_v61 }
 0x177   : > { %2549 = vmatmul.mubr.msk.f32.gmra.mrb[12].mxu0 %vm247_vm9, %v980_v62 }
 0x178   : > { %846 = vperm.xlu1 %2712, %v843_v60  }
 0x179   : > { %v594_v6 = vpop.trf.xlu1 }
 0x17a   : > { %v981_v8 = vpop.trf.xlu0  ;;  %2524 = vmatmul.mubr.msk.f32.gmra.mrb[14].mxu1 %vm247_vm9, %v594_v6 }
 0x17b   : > { %2551 = vmatprep.mubr.msk.f32.mxu0 %vm247_vm9, %v981_v8 }
 0x17c   : > { %1187 = vperm.xlu1 %2712, %v2296_v5  }
 0x17d   : > { %v595_v12 = vpop.trf.xlu1 }
 0x17e   : > { %v982_v13 = vpop.trf.xlu0  ;;  %2526 = vmatprep.mubr.msk.f32.mxu1 %vm247_vm9, %v595_v12 }
 0x17f   : > { %2552 = vmatmul.mubr.msk.f32.gmra.mrb[14].mxu0 %vm247_vm9, %v982_v13 }
 0x180   : > { %1212 = vperm.xlu1 %2712, %v1209_v11  }
 0x181   : > { %v596_v15 = vpop.trf.xlu1 }
 0x182   : > { %v983_v16 = vpop.trf.xlu0  ;;  %2527 = vmatmul.mubr.msk.f32.gmra.mrb[16].mxu1 %vm247_vm9, %v596_v15 }
 0x183   : > { %2554 = vmatprep.mubr.msk.f32.mxu0 %vm247_vm9, %v983_v16 }
 0x184   : > { %824 = vperm.xlu0 %2701, %v821_v57   ;;  %1234 = vperm.xlu1 %2712, %v1231_v4  }
 0x185   : > { %v597_v23 = vpop.trf.xlu1 }
 0x186   : > { %v984_v24 = vpop.trf.xlu0  ;;  %2529 = vmatprep.mubr.msk.f32.mxu1 %vm247_vm9, %v597_v23 }
 0x187   : > { %2555 = vmatmul.mubr.msk.f32.gmra.mrb[16].mxu0 %vm247_vm9, %v984_v24 }
 0x188   : > { %1576 = vperm.xlu1 %2712, %v2331_v53  }
 0x189   : > { %v598_v2 = vpop.trf.xlu1 }
 0x18a   : > { %v985_v10 = vpop.trf.xlu0  ;;  %2530 = vmatmul.mubr.msk.f32.gmra.mrb[18].mxu1 %vm247_vm9, %v598_v2 }
 0x18b   : > { %2557 = vmatprep.mubr.msk.f32.mxu0 %vm247_vm9, %v985_v10 }
 0x18c   : > { %1601 = vperm.xlu1 %2712, %v1598_v1  }
 0x18d   : > { %v599_v26 = vpop.trf.xlu1 }
 0x18e   : > { %v986_v7 = vpop.trf.xlu0  ;;  %2532 = vmatprep.mubr.msk.f32.mxu1 %vm247_vm9, %v599_v26 }
 0x18f   : > { %2558 = vmatmul.mubr.msk.f32.gmra.mrb[18].mxu0 %vm247_vm9, %v986_v7 }
 0x190   : > { %1623 = vperm.xlu1 %2712, %v1620_v25  }
 0x191   : > { %v600_v28 = vpop.trf.xlu1 }
 0x192   : > { %v987_v56 = vpop.trf.xlu0  ;;  %2533 = vmatmul.mubr.msk.f32.gmra.mrb[20].mxu1 %vm247_vm9, %v600_v28 }
 0x193   : > { %2560 = vmatprep.mubr.msk.f32.mxu0 %vm247_vm9, %v987_v56 }
 0x194   : > { %1965 = vperm.xlu1 %2712, %v2366_v9  }
 0x195   : > { %v601_v30 = vpop.trf.xlu1 }
 0x196   : > { %v988_v31 = vpop.trf.xlu0  ;;  %2535 = vmatprep.mubr.msk.f32.mxu1 %vm247_vm9, %v601_v30 }
 0x197   : > { %2561 = vmatmul.mubr.msk.f32.gmra.mrb[20].mxu0 %vm247_vm9, %v988_v31 }
 0x198   : > { %1990 = vperm.xlu1 %2712, %v1987_v29  }
 0x199   : > { %v602_v33 = vpop.trf.xlu1 }
 0x19a   : > { %v989_v34 = vpop.trf.xlu0  ;;  %2536 = vmatmul.mubr.msk.f32.gmra.mrb[22].mxu1 %vm247_vm9, %v602_v33 }
 0x19b   : > { %2563 = vmatprep.mubr.msk.f32.mxu0 %vm247_vm9, %v989_v34 }
 0x19c   : > { %2012 = vperm.xlu1 %2712, %v2009_v32  }
 0x19d   : > { %v1364_v35 = vpop.trf.xlu1 }
 0x19e   : > { %v990_v36 = vpop.trf.xlu0  ;;  %2570 = vmatprep.mubr.msk.f32.mxu1 %vm247_vm9, %v1364_v35  ;;  %v457_v35 = vlaneseq }
 0x19f   : > { %2564 = vmatmul.mubr.msk.f32.gmra.mrb[22].mxu0 %vm247_vm9, %v990_v36 }
 0x1a0   : > { %v3279_v36 = vshrl.u32 %v457_v35, 7 }
 0x1a1   : > { %v1365_v63 = vpop.trf.xlu1 }
 0x1a2   : > { %v1753_v37 = vpop.trf.xlu0  ;;  %2571 = vmatmul.mubr.msk.f32.vlgmr.msra.gmra.mrb[24].mxu1 %vm247_vm9, %v1365_v63  ;;  %v459_v63 = vadd.s32 8, %v3279_v36 }
 0x1a3   : > { %2598 = vmatprep.mubr.msk.f32.mxu0 %vm247_vm9, %v1753_v37  ;;  %v3282_v37 = vand.u32 127, %v457_v35 }
 0x1a5   : > { %v1366_v41 = vpop.trf.xlu1  ;;  %vm477_vm10 = vcmp.eq.s32.totalorder %v459_v63, %v3282_v37  ;;  %vm476_vm11 = vcmp.eq.s32.totalorder %v3279_v36, %v3282_v37 }
 0x1a6   : > { %v1754_v20 = vpop.trf.xlu0  ;;  %2573 = vmatprep.mubr.msk.f32.mxu1 %vm247_vm9, %v1366_v41 }
 0x1a7   : > { %2599 = vmatmul.mubr.msk.f32.vlgmr.msra.gmra.mrb[24].mxu0 %vm247_vm9, %v1754_v20 }
 0x1a9   : > { %v1367_v21 = vpop.trf.xlu1 }
 0x1aa   : > { %v1755_v42 = vpop.trf.xlu0  ;;  %2574 = vmatmul.mubr.msk.f32.gmra.mrb[26].mxu1 %vm247_vm9, %v1367_v21 }
 0x1ab   : > { %2601 = vmatprep.mubr.msk.f32.mxu0 %vm247_vm9, %v1755_v42 }
 0x1ad   : > { %v1368_v43 = vpop.trf.xlu1 }
 0x1ae   : > { %v1756_v44 = vpop.trf.xlu0  ;;  %2576 = vmatprep.mubr.msk.f32.mxu1 %vm247_vm9, %v1368_v43 }
 0x1af   : > { %2602 = vmatmul.mubr.msk.f32.gmra.mrb[26].mxu0 %vm247_vm9, %v1756_v44 }
 0x1b1   : > { %v1369_v18 = vpop.trf.xlu1 }
 0x1b2   : > { %v1757_v14 = vpop.trf.xlu0  ;;  %2577 = vmatmul.mubr.msk.f32.gmra.mrb[28].mxu1 %vm247_vm9, %v1369_v18 }
 0x1b3   : > { %2604 = vmatprep.mubr.msk.f32.mxu0 %vm247_vm9, %v1757_v14 }
 0x1b5   : > { %v1370_v17 = vpop.trf.xlu1 }
 0x1b6   : > { %v1758_v40 = vpop.trf.xlu0  ;;  %2579 = vmatprep.mubr.msk.f32.mxu1 %vm247_vm9, %v1370_v17 }
 0x1b7   : > { %2605 = vmatmul.mubr.msk.f32.gmra.mrb[28].mxu0 %vm247_vm9, %v1758_v40 }
 0x1b9   : > { %v1371_v45 = vpop.trf.xlu1 }
 0x1ba   : > { %v1759_v46 = vpop.trf.xlu0  ;;  %2580 = vmatmul.mubr.msk.f32.gmra.mrb[30].mxu1 %vm247_vm9, %v1371_v45  ;;  %v3302_v45 = vsel %vm477_vm10, 1.0, %v2881_v3 }
 0x1bb   : > { %2607 = vmatprep.mubr.msk.f32.mxu0 %vm247_vm9, %v1759_v46 }
 0x1bd   : > { %v1372_v38 = vpop.trf.xlu1 }
 0x1be   : > { %v1760_v39 = vpop.trf.xlu0  ;;  %2582 = vmatprep.mubr.msk.f32.mxu1 %vm247_vm9, %v1372_v38 }
 0x1bf   : > { %2608 = vmatmul.mubr.msk.f32.gmra.mrb[30].mxu0 %vm247_vm9, %v1760_v39 }
 0x1c1   : > { %v1373_v47 = vpop.trf.xlu1 }
 0x1c2   : > { %v1761_v48 = vpop.trf.xlu0  ;;  %2583 = vmatmul.mubr.msk.f32.gmra.mrb[32].mxu1 %vm247_vm9, %v1373_v47 }
 0x1c3   : > { %2610 = vmatprep.mubr.msk.f32.mxu0 %vm247_vm9, %v1761_v48  ;;  %v3310_v48 = vsel %vm476_vm11, 1.0, %v2881_v3 }
 0x1c5   : > { %v1374_v50 = vpop.trf.xlu1 }
 0x1c6   : > { %v1762_v51 = vpop.trf.xlu0  ;;  %2585 = vmatprep.mubr.msk.f32.mxu1 %vm247_vm9, %v1374_v50  ;;  %v2488_v52 = vpop.f32.mrb[0].mxu0 }
 0x1c7   : > { %2611 = vmatmul.mubr.msk.f32.gmra.mrb[32].mxu0 %vm247_vm9, %v1762_v51  ;;  %v362_v54 = vpop.f32.mrb[1].mxu0  ;;  %v3284_v41 = vmul.f32 0.06666667, %v2488_v52  ;;  %v461_v51 = vadd.s32 24, %v3279_v36 }
 0x1c8   : > { %v3288_v21 = vmul.f32 0.06666667, %v362_v54 }
 0x1c9   : > { %v1375_v55 = vpop.trf.xlu1  ;;  %vm479_vm12 = vcmp.eq.s32.totalorder %v461_v51, %v3282_v37 }
 0x1ca   : > { %v1763_v57 = vpop.trf.xlu0  ;;  %2586 = vmatmul.mubr.msk.f32.gmra.mrb[34].mxu1 %vm247_vm9, %v1375_v55 }
 0x1cb   : > { %2613 = vmatprep.mubr.msk.f32.mxu0 %vm247_vm9, %v1763_v57  ;;  %v460_v57 = vadd.s32 16, %v3279_v36 }
 0x1cd   : > { %v1376_v58 = vpop.trf.xlu1  ;;  %vm478_vm13 = vcmp.eq.s32.totalorder %v460_v57, %v3282_v37 }
 0x1ce   : > { %v1764_v59 = vpop.trf.xlu0  ;;  %2588 = vmatprep.mubr.msk.f32.mxu1 %vm247_vm9, %v1376_v58  ;;  %v3215_v60 = vpop.f32.mrb[2].mxu0 }
 0x1cf   : > { %2614 = vmatmul.mubr.msk.f32.gmra.mrb[34].mxu0 %vm247_vm9, %v1764_v59  ;;  %v3218_v61 = vpop.f32.mrb[3].mxu0  ;;  %v3316_v58 = vmul.f32 0.06666667, %v3215_v60 }
 0x1d1   : > { %v1377_v62 = vpop.trf.xlu1 }
 0x1d2   : > { %v1765_v0 = vpop.trf.xlu0  ;;  %2589 = vmatmul.mubr.msk.f32.gmra.mrb[36].mxu1 %vm247_vm9, %v1377_v62 }
 0x1d3   : > { %2616 = vmatprep.mubr.msk.f32.mxu0 %vm247_vm9, %v1765_v0  ;;  %v3322_v0 = vmul.f32 0.06666667, %v3218_v61 }
 0x1d5   : > { %v1378_v5 = vpop.trf.xlu1 }
 0x1d6   : > { %v1766_v49 = vpop.trf.xlu0  ;;  %2591 = vmatprep.mubr.msk.f32.mxu1 %vm247_vm9, %v1378_v5  ;;  %v3223_v6 = vpop.f32.mrb[4].mxu0 }
 0x1d7   : > { %2617 = vmatmul.mubr.msk.f32.gmra.mrb[36].mxu0 %vm247_vm9, %v1766_v49  ;;  %v3226_v8 = vpop.f32.mrb[5].mxu0 }
 0x1d9   : > { %v1379_v11 = vpop.trf.xlu1 }
 0x1da   : > { %v1767_v12 = vpop.trf.xlu0  ;;  %2592 = vmatmul.mubr.msk.f32.gmra.mrb[38].mxu1 %vm247_vm9, %v1379_v11 }
 0x1db   : > { %2619 = vmatprep.mubr.msk.f32.mxu0 %vm247_vm9, %v1767_v12 }
 0x1de   : > { %v1768_v13 = vpop.trf.xlu0  ;;  %v3230_v4 = vpop.f32.mrb[6].mxu0 }
 0x1df   : > { %2620 = vmatmul.mubr.msk.f32.gmra.mrb[38].mxu0 %vm247_vm9, %v1768_v13  ;;  %v3233_v15 = vpop.f32.mrb[7].mxu0 }
 0x1e6   : > { %v3235_v16 = vpop.f32.mrb[0].mxu1 }
 0x1e7   : > { %v3237_v19 = vpop.f32.mrb[1].mxu1 }
 0x1ee   : > { %v3239_v53 = vpop.f32.mrb[2].mxu1 }
 0x1ef   : > { %v3241_v22 = vpop.f32.mrb[3].mxu1 }
 0x1f3   : > { %v800_v23 = vpop.permute.xlu1 %799 }
 0x1f4   : > { %2739 = vrcp.f32 %v800_v23 }
 0x1f6   : > { %v3243_v24 = vpop.f32.mrb[4].mxu1 }
 0x1f7   : > { %v3245_v1 = vpop.f32.mrb[5].mxu1  ;;  %v3247_v2 = vpop.permute.xlu1 %846 }
 0x1f8   : > { %v850_v40 = vmul.f32 %v3247_v2, %v3284_v41  ;;  %v849_v38 = vmul.f32 %v3247_v2, %v3288_v21 }
 0x1fb   : > { %v1188_v10 = vpop.permute.xlu1 %1187 }
 0x1fc   : > { %2741 = vrcp.f32 %v1188_v10 }
 0x1fe   : > { %v2509_v25 = vpop.f32.mrb[6].mxu1  ;;  %v3286_v20 = vpop.eup %2739 }
 0x1ff   : > { %v3249_v26 = vmul.f32 0.06666667, %v2509_v25  ;;  %v432_v7 = vpop.f32.mrb[7].mxu1  ;;  %v3251_v9 = vpop.permute.xlu1 %1212 }
 0x200   : > { %v3253_v27 = vmul.f32 0.06666667, %v432_v7 }
 0x201   : > { %v3257_v28 = vmul.f32 %v3247_v2, %v3249_v26 }
 0x202   : > { %v3261_v56 = vmul.f32 %v3247_v2, %v3253_v27 }
 0x203   : > { %v3263_v29 = vpop.permute.xlu1 %1234  ;;  %v3292_v18 = vpop.permute.xlu0 %824 }
 0x204   : > { %v1238_v11 = vmul.f32 %v3263_v29, %v3284_v41  ;;  %v1237_v61 = vmul.f32 %v3263_v29, %v3288_v21 }
 0x206   : > { %v3307_v39 = vpop.eup %2741 }
 0x207   : > { %v3265_v30 = vpop.permute.xlu1 %1576 }
 0x20b   : > { %v3267_v31 = vpop.permute.xlu1 %1601 }
 0x20f   : > { %v3269_v32 = vpop.permute.xlu1 %1623 }
 0x210   : > { %v3273_v33 = vmul.f32 %v3269_v32, %v3249_v26  ;;  %v3277_v34 = vmul.f32 %v3269_v32, %v3253_v27 }
 0x235   : > { %v2516_v42 = vpop.f32.mrb[8].mxu1 }
 0x236   : > { %v804_v43 = vmul.f32 %v3286_v20, %v2516_v42  ;;  %v717_v44 = vpop.f32.mrb[9].mxu1 }
 0x237   : > { %v803_v14 = vmul.f32 %v3286_v20, %v717_v44 }
 0x238   : > { %v828_v17 = vmul.f32 %v3292_v18, %v804_v43 }
 0x239   : > { %v827_v46 = vmul.f32 %v3292_v18, %v803_v14 }
 0x23a   : > { %v866_v47 = vadd.f32 %v850_v40, %v828_v17  ;;  %v2544_v50 = vpop.f32.mrb[8].mxu0 }
 0x23b   : > { %v865_v52 = vadd.f32 %v849_v38, %v827_v46  ;;  %v1192_v54 = vmul.f32 %v3307_v39, %v2544_v50  ;;  %v1105_v55 = vpop.f32.mrb[9].mxu0 }
 0x23c   : > { %v882_v59 = vadd.f32 %v3302_v45, %v866_v47  ;;  %v1191_v62 = vmul.f32 %v3307_v39, %v1105_v55 }
 0x23d   : > { %v881_v5 = vadd.f32 %v3310_v48, %v865_v52  ;;  %v1216_v49 = vmul.f32 %v3251_v9, %v1192_v54  ;;  %v2519_v12 = vpop.f32.mrb[10].mxu1 }
 0x23e   : > { %898 = vst [vmem:[%s3334_s29 + $0x8] sm:$0xff] %v882_v59  ;;  %v1215_v60 = vmul.f32 %v3251_v9, %v1191_v62  ;;  %v806_v13 = vmul.f32 %v3286_v20, %v2519_v12  ;;  %v727_v23 = vpop.f32.mrb[11].mxu1 }
 0x23f   : > { %897 = vst [vmem:[%s3334_s29] sm:$0xff] %v881_v5  ;;  %v1254_v10 = vadd.f32 %v1238_v11, %v1216_v49  ;;  %v805_v25 = vmul.f32 %v3286_v20, %v727_v23 }
 0x240   : > { %2790 = shalt.err (!%p2787_p2)
}
 0x241   : > { %s2791_s6 = scalar_lea.hbm %s3331_s27, 64  ;;  %s2795_s23 = scalar_lea.hbm %s3889_s2, 128 }
 0x242   : > { %p2792_p4 = scmp.ne.s32.totalorder %s3331_s27, %s2791_s6  ;;  %p2796_p9 = scmp.lt.u32.totalorder %s3331_s27, %s3889_s2 }
 0x243   : > { %p2797_p1 = scmp.lt.u32.totalorder %s2795_s23, %s2791_s6  ;;  %p2799_p6 = scmp.lt.u32.totalorder %s2791_s6, %s3331_s27 }
 0x244   : > { %p2793_p5 = pnand %p2792_p4, %p3897_p11 }
 0x245   : > { %p2798_p3 = por %p2797_p1, %p2796_p9 }
 0x246   : > { %p2794_p7 = pneg %p2793_p5 }
 0x247   : > { %p2800_p12 = por %p2799_p6, %p2798_p3 }
 0x249   : > { %p2801_p13 = pnand %p2800_p12, %p2794_p7 }
 0x24b   : > { %2804 = shalt.err (!%p2801_p13)
}
 0x24c   : > { %2646 = dma.vmem_to_hbm [thread:$0]  (%p3897_p11), %s3342_s28, 64, %s3331_s27, %s2081_s30   ;;  %v1253_v7 = vadd.f32 %v1237_v61, %v1215_v60  ;;  %v830_v35 = vmul.f32 %v3292_v18, %v806_v13  ;;  %v852_v63 = vmul.f32 %v3247_v2, %v3316_v58  ;;  %v1270_v42 = vadd.f32 %v3302_v45, %v1254_v10  ;;  %v2547_v38 = vpop.f32.mrb[10].mxu0  ;;  %v2522_v12 = vpop.f32.mrb[12].mxu1 }
 0x24d   : > { %v3376_v43 = vsel %vm479_vm12, 1.0, %v2881_v3  ;;  %v829_v44 = vmul.f32 %v3292_v18, %v805_v25  ;;  %v851_v14 = vmul.f32 %v3247_v2, %v3322_v0  ;;  %v3385_v46 = vsel %vm478_vm13, 1.0, %v2881_v3  ;;  %v1115_v52 = vpop.f32.mrb[11].mxu0  ;;  %s2391_s20 = sshll.u32 %s2927_s16, 13  ;;  %s2112_s22 = sshll.u32 %s3334_s29, 4  ;;  %s3840_s22 = int_to_ptr.vmem [resolvable:$true] %s2112_s22 }
 0x24e   : > { %v1269_v17 = vadd.f32 %v3310_v48, %v1253_v7  ;;  %v868_v40 = vadd.f32 %v852_v63, %v830_v35  ;;  %v463_v47 = vadd.s32 40, %v3279_v36  ;;  %2298 = vst [vmem:[%s3334_s29 + $0x88] sm:$0xff] %v1270_v42  ;;  %v1194_v51 = vmul.f32 %v3307_v39, %v2547_v38  ;;  %v2550_v38 = vpop.f32.mrb[12].mxu0  ;;  %s3838_s28 = scalar_lea.hbm %s3890_s3, %s2391_s20  ;;  %s2086_s16 = scalar_lea.sflag [#allocation7], %s3010_s5 }
 0x24f   : > { %v867_v50 = vadd.f32 %v851_v14, %v829_v44  ;;  %v462_v54 = vadd.s32 32, %v3279_v36  ;;  %v3392_v55 = vmul.f32 0.06666667, %v3223_v6  ;;  %v1193_v59 = vmul.f32 %v3307_v39, %v1115_v52  ;;  %v1125_v52 = vpop.f32.mrb[13].mxu0  ;;  %s2805_s30 = scalar_lea.vmem %s3840_s22, 8192  ;;  %s2883_s9 = smov [#allocation6]  }
 0x250   : > { %2297 = vst [vmem:[%s3334_s29 + $0x80] sm:$0xff] %v1269_v17  ;;  %v884_v57 = vadd.f32 %v3376_v43, %v868_v40  ;;  %v3398_v62 = vmul.f32 0.06666667, %v3226_v8  ;;  %v1218_v49 = vmul.f32 %v3251_v9, %v1194_v51  ;;  %v1240_v11 = vmul.f32 %v3263_v29, %v3316_v58  ;;  %v737_v8 = vpop.f32.mrb[13].mxu1  ;;  %p2806_p8 = scmp.ne.s32.totalorder %s3840_s22, %s2805_s30  ;;  %s2809_s10 = sshll.u32 %s2883_s9, 4  ;;  %s2810_s10 = int_to_ptr.vmem [resolvable:$false] %s2809_s10 }
 0x251   : > { %v883_v5 = vadd.f32 %v3385_v46, %v867_v50  ;;  %v1217_v6 = vmul.f32 %v3251_v9, %v1193_v59  ;;  %v1239_v60 = vmul.f32 %v3263_v29, %v3322_v0  ;;  %vm481_vm14 = vcmp.eq.s32.totalorder %v463_v47, %v3282_v37  ;;  %s2811_s11 = scalar_lea.vmem %s2810_s10, 16384  ;;  %p2812_p2 = scmp.lt.s32.totalorder %s3840_s22, %s2810_s10 }
 0x252   : > { %900 = vst [vmem:[%s3334_s29 + $0x18] sm:$0xff] %v884_v57  ;;  %v808_v61 = vmul.f32 %v3286_v20, %v2522_v12  ;;  %v1256_v13 = vadd.f32 %v1240_v11, %v1218_v49  ;;  %vm480_vm15 = vcmp.eq.s32.totalorder %v462_v54, %v3282_v37  ;;  %v807_v23 = vmul.f32 %v3286_v20, %v737_v8  ;;  %p2807_p10 = pnand %p2806_p8, %p3897_p11  ;;  %p2813_p4 = scmp.lt.s32.totalorder %s2811_s11, %s2805_s30 }
 0x253   : > { %899 = vst [vmem:[%s3334_s29 + $0x10] sm:$0xff] %v883_v5  ;;  %v1255_v10 = vadd.f32 %v1239_v60, %v1217_v6  ;;  %v854_v7 = vmul.f32 %v3247_v2, %v3392_v55  ;;  %v3418_v63 = vsel %vm481_vm14, 1.0, %v2881_v3  ;;  %v853_v44 = vmul.f32 %v3247_v2, %v3398_v62  ;;  %v2525_v60 = vpop.f32.mrb[14].mxu1 }
 0x254   : > { %v832_v25 = vmul.f32 %v3292_v18, %v808_v61  ;;  %v1272_v35 = vadd.f32 %v3376_v43, %v1256_v13  ;;  %v831_v42 = vmul.f32 %v3292_v18, %v807_v23  ;;  %v3425_v40 = vsel %vm480_vm15, 1.0, %v2881_v3  ;;  %p2808_p0 = pneg %p2807_p10  ;;  %p2814_p5 = por %p2813_p4, %p2812_p2 }
 0x255   : > { %v1271_v14 = vadd.f32 %v3385_v46, %v1255_v10  ;;  %v465_v47 = vadd.s32 56, %v3279_v36  ;;  %v1196_v51 = vmul.f32 %v3307_v39, %v2550_v38  ;;  %v464_v54 = vadd.s32 48, %v3279_v36 }
 0x256   : > { %v870_v17 = vadd.f32 %v854_v7, %v832_v25  ;;  %2300 = vst [vmem:[%s3334_s29 + $0x98] sm:$0xff] %v1272_v35  ;;  %v869_v50 = vadd.f32 %v853_v44, %v831_v42  ;;  %v3432_v57 = vmul.f32 0.06666667, %v3230_v4  ;;  %v1195_v5 = vmul.f32 %v3307_v39, %v1125_v52  ;;  %p2815_p7 = pnand %p2814_p5, %p2808_p0 }
 0x257   : > { %2299 = vst [vmem:[%s3334_s29 + $0x90] sm:$0xff] %v1271_v14  ;;  %v3438_v49 = vmul.f32 0.06666667, %v3233_v15  ;;  %v1220_v12 = vmul.f32 %v3251_v9, %v1196_v51  ;;  %v1242_v6 = vmul.f32 %v3263_v29, %v3392_v55  ;;  %v1241_v61 = vmul.f32 %v3263_v29, %v3398_v62  ;;  %v747_v15 = vpop.f32.mrb[15].mxu1 }
 0x258   : > { %v886_v59 = vadd.f32 %v3418_v63, %v870_v17  ;;  %v885_v11 = vadd.f32 %v3425_v40, %v869_v50  ;;  %v1219_v4 = vmul.f32 %v3251_v9, %v1195_v5  ;;  %vm483_vm0 = vcmp.eq.s32.totalorder %v465_v47, %v3282_v37  ;;  %v2553_v50 = vpop.f32.mrb[14].mxu0 }
 0x259   : > { %v810_v8 = vmul.f32 %v3286_v20, %v2525_v60  ;;  %v1258_v13 = vadd.f32 %v1242_v6, %v1220_v12  ;;  %vm482_vm1 = vcmp.eq.s32.totalorder %v464_v54, %v3282_v37  ;;  %v809_v23 = vmul.f32 %v3286_v20, %v747_v15  ;;  %v2528_v15 = vpop.f32.mrb[16].mxu1 }
 0x25a   : > { %902 = vst [vmem:[%s3334_s29 + $0x28] sm:$0xff] %v886_v59  ;;  %901 = vst [vmem:[%s3334_s29 + $0x20] sm:$0xff] %v885_v11  ;;  %v1257_v10 = vadd.f32 %v1241_v61, %v1219_v4  ;;  %v856_v7 = vmul.f32 %v3247_v2, %v3432_v57  ;;  %v3458_v42 = vsel %vm483_vm0, 1.0, %v2881_v3  ;;  %v855_v14 = vmul.f32 %v3247_v2, %v3438_v49  ;;  %v1135_v59 = vpop.f32.mrb[15].mxu0 }
 0x25b   : > { %v834_v25 = vmul.f32 %v3292_v18, %v810_v8  ;;  %v1274_v35 = vadd.f32 %v3418_v63, %v1258_v13  ;;  %v833_v44 = vmul.f32 %v3292_v18, %v809_v23  ;;  %v3465_v47 = vsel %vm482_vm1, 1.0, %v2881_v3 }
 0x25c   : > { %v1273_v17 = vadd.f32 %v3425_v40, %v1257_v10  ;;  %v467_v51 = vadd.s32 72, %v3279_v36  ;;  %v1198_v54 = vmul.f32 %v3307_v39, %v2553_v50  ;;  %v466_v5 = vadd.s32 64, %v3279_v36 }
 0x25d   : > { %v872_v38 = vadd.f32 %v856_v7, %v834_v25  ;;  %2302 = vst [vmem:[%s3334_s29 + $0xa8] sm:$0xff] %v1274_v35  ;;  %v871_v52 = vadd.f32 %v855_v14, %v833_v44  ;;  %v3472_v11 = vmul.f32 0.06666667, %v3235_v16  ;;  %v1197_v6 = vmul.f32 %v3307_v39, %v1135_v59  ;;  %v2556_v59 = vpop.f32.mrb[16].mxu0 }
 0x25e   : > { %2301 = vst [vmem:[%s3334_s29 + $0xa0] sm:$0xff] %v1273_v17  ;;  %v3478_v60 = vmul.f32 0.06666667, %v3237_v19  ;;  %v1222_v61 = vmul.f32 %v3251_v9, %v1198_v54  ;;  %v1244_v8 = vmul.f32 %v3263_v29, %v3432_v57  ;;  %v1243_v13 = vmul.f32 %v3263_v29, %v3438_v49  ;;  %v757_v19 = vpop.f32.mrb[17].mxu1 }
 0x25f   : > { %v888_v12 = vadd.f32 %v3458_v42, %v872_v38  ;;  %v887_v4 = vadd.f32 %v3465_v47, %v871_v52  ;;  %v1221_v16 = vmul.f32 %v3251_v9, %v1197_v6  ;;  %vm485_vm2 = vcmp.eq.s32.totalorder %v467_v51, %v3282_v37 }
 0x260   : > { %v812_v23 = vmul.f32 %v3286_v20, %v2528_v15  ;;  %v1260_v10 = vadd.f32 %v1244_v8, %v1222_v61  ;;  %vm484_vm3 = vcmp.eq.s32.totalorder %v466_v5, %v3282_v37  ;;  %v811_v25 = vmul.f32 %v3286_v20, %v757_v19 }
 0x261   : > { %904 = vst [vmem:[%s3334_s29 + $0x38] sm:$0xff] %v888_v12  ;;  %903 = vst [vmem:[%s3334_s29 + $0x30] sm:$0xff] %v887_v4  ;;  %v1259_v7 = vadd.f32 %v1243_v13, %v1221_v16  ;;  %v858_v44 = vmul.f32 %v3247_v2, %v3472_v11  ;;  %v3498_v17 = vsel %vm485_vm2, 1.0, %v2881_v3  ;;  %v857_v50 = vmul.f32 %v3247_v2, %v3478_v60  ;;  %v1145_v4 = vpop.f32.mrb[17].mxu0 }
 0x262   : > { %v836_v35 = vmul.f32 %v3292_v18, %v812_v23  ;;  %v1276_v14 = vadd.f32 %v3458_v42, %v1260_v10  ;;  %v835_v38 = vmul.f32 %v3292_v18, %v811_v25  ;;  %v3505_v54 = vsel %vm484_vm3, 1.0, %v2881_v3  ;;  %v2531_v25 = vpop.f32.mrb[18].mxu1 }
 0x263   : > { %v1275_v51 = vadd.f32 %v3465_v47, %v1259_v7  ;;  %v469_v5 = vadd.s32 88, %v3279_v36  ;;  %v1200_v6 = vmul.f32 %v3307_v39, %v2556_v59  ;;  %v468_v61 = vadd.s32 80, %v3279_v36 }
 0x264   : > { %v874_v52 = vadd.f32 %v858_v44, %v836_v35  ;;  %2304 = vst [vmem:[%s3334_s29 + $0xb8] sm:$0xff] %v1276_v14  ;;  %v873_v12 = vadd.f32 %v857_v50, %v835_v38  ;;  %v3512_v8 = vmul.f32 0.06666667, %v3239_v53  ;;  %v1199_v16 = vmul.f32 %v3307_v39, %v1145_v4 }
 0x265   : > { %2303 = vst [vmem:[%s3334_s29 + $0xb0] sm:$0xff] %v1275_v51  ;;  %v3518_v13 = vmul.f32 0.06666667, %v3241_v22  ;;  %v1224_v19 = vmul.f32 %v3251_v9, %v1200_v6  ;;  %v1246_v10 = vmul.f32 %v3263_v29, %v3472_v11  ;;  %v1245_v7 = vmul.f32 %v3263_v29, %v3478_v60  ;;  %v767_v22 = vpop.f32.mrb[19].mxu1 }
 0x266   : > { %v890_v15 = vadd.f32 %v3498_v17, %v874_v52  ;;  %v889_v23 = vadd.f32 %v3505_v54, %v873_v12  ;;  %v1223_v53 = vmul.f32 %v3251_v9, %v1199_v16  ;;  %vm487_vm4 = vcmp.eq.s32.totalorder %v469_v5, %v3282_v37 }
 0x267   : > { %v814_v35 = vmul.f32 %v3286_v20, %v2531_v25  ;;  %v1262_v44 = vadd.f32 %v1246_v10, %v1224_v19  ;;  %vm486_vm5 = vcmp.eq.s32.totalorder %v468_v61, %v3282_v37  ;;  %v813_v14 = vmul.f32 %v3286_v20, %v767_v22 }
 0x268   : > { %906 = vst [vmem:[%s3334_s29 + $0x48] sm:$0xff] %v890_v15  ;;  %905 = vst [vmem:[%s3334_s29 + $0x40] sm:$0xff] %v889_v23  ;;  %v1261_v38 = vadd.f32 %v1245_v7, %v1223_v53  ;;  %v860_v51 = vmul.f32 %v3247_v2, %v3512_v8  ;;  %v3538_v59 = vsel %vm487_vm4, 1.0, %v2881_v3  ;;  %v859_v12 = vmul.f32 %v3247_v2, %v3518_v13  ;;  %v2559_v15 = vpop.f32.mrb[18].mxu0 }
 0x269   : > { %v838_v50 = vmul.f32 %v3292_v18, %v814_v35  ;;  %v1278_v52 = vadd.f32 %v3498_v17, %v1262_v44  ;;  %v837_v5 = vmul.f32 %v3292_v18, %v813_v14  ;;  %v3545_v61 = vsel %vm486_vm5, 1.0, %v2881_v3  ;;  %v1155_v10 = vpop.f32.mrb[19].mxu0 }
 0x26a   : > { %v1277_v6 = vadd.f32 %v3505_v54, %v1261_v38  ;;  %v471_v16 = vadd.s32 104, %v3279_v36  ;;  %v1202_v19 = vmul.f32 %v3307_v39, %v2559_v15  ;;  %v470_v25 = vadd.s32 96, %v3279_v36 }
 0x26b   : > { %v876_v4 = vadd.f32 %v860_v51, %v838_v50  ;;  %2306 = vst [vmem:[%s3334_s29 + $0xc8] sm:$0xff] %v1278_v52  ;;  %v875_v23 = vadd.f32 %v859_v12, %v837_v5  ;;  %v3552_v53 = vmul.f32 0.06666667, %v3243_v24  ;;  %v1201_v35 = vmul.f32 %v3307_v39, %v1155_v10  ;;  %v2534_v50 = vpop.f32.mrb[20].mxu1 }
 0x26c   : > { %2305 = vst [vmem:[%s3334_s29 + $0xc0] sm:$0xff] %v1277_v6  ;;  %v3558_v22 = vmul.f32 0.06666667, %v3245_v1  ;;  %v1226_v14 = vmul.f32 %v3251_v9, %v1202_v19  ;;  %v1248_v38 = vmul.f32 %v3263_v29, %v3512_v8  ;;  %v1247_v51 = vmul.f32 %v3263_v29, %v3518_v13  ;;  %v777_v1 = vpop.f32.mrb[21].mxu1 }
 0x26d   : > { %v892_v7 = vadd.f32 %v3538_v59, %v876_v4  ;;  %v891_v44 = vadd.f32 %v3545_v61, %v875_v23  ;;  %v1225_v24 = vmul.f32 %v3251_v9, %v1201_v35  ;;  %vm489_vm6 = vcmp.eq.s32.totalorder %v471_v16, %v3282_v37 }
 0x26e   : > { %v816_v52 = vmul.f32 %v3286_v20, %v2534_v50  ;;  %v1264_v5 = vadd.f32 %v1248_v38, %v1226_v14  ;;  %vm488_vm7 = vcmp.eq.s32.totalorder %v470_v25, %v3282_v37  ;;  %v815_v12 = vmul.f32 %v3286_v20, %v777_v1  ;;  %v1966_v1 = vpop.permute.xlu1 %1965 }
 0x26f   : > { %908 = vst [vmem:[%s3334_s29 + $0x58] sm:$0xff] %v892_v7  ;;  %907 = vst [vmem:[%s3334_s29 + $0x50] sm:$0xff] %v891_v44  ;;  %v1263_v6 = vadd.f32 %v1247_v51, %v1225_v24  ;;  %v862_v15 = vmul.f32 %v3247_v2, %v3552_v53  ;;  %v3578_v16 = vsel %vm489_vm6, 1.0, %v2881_v3  ;;  %v861_v10 = vmul.f32 %v3247_v2, %v3558_v22  ;;  %v2562_v44 = vpop.f32.mrb[20].mxu0 }
 0x270   : > { %v840_v4 = vmul.f32 %v3292_v18, %v816_v52  ;;  %v1280_v23 = vadd.f32 %v3538_v59, %v1264_v5  ;;  %v839_v19 = vmul.f32 %v3292_v18, %v815_v12  ;;  %v3585_v35 = vsel %vm488_vm7, 1.0, %v2881_v3  ;;  %v1165_v24 = vpop.f32.mrb[21].mxu0 }
 0x271   : > { %v1279_v25 = vadd.f32 %v3545_v61, %v1263_v6  ;;  %v473_v14 = vadd.s32 120, %v3279_v36  ;;  %2743 = vrcp.f32 %v3265_v30  ;;  %v1204_v50 = vmul.f32 %v3307_v39, %v2562_v44  ;;  %v2537_v6 = vpop.f32.mrb[22].mxu1 }
 0x272   : > { %v878_v7 = vadd.f32 %v862_v15, %v840_v4  ;;  %2308 = vst [vmem:[%s3334_s29 + $0xd8] sm:$0xff] %v1280_v23  ;;  %v877_v38 = vadd.f32 %v861_v10, %v839_v19  ;;  %v472_v2 = vadd.s32 112, %v3279_v36  ;;  %v1203_v52 = vmul.f32 %v3307_v39, %v1165_v24  ;;  %v787_v23 = vpop.f32.mrb[23].mxu1 }
 0x273   : > { %2307 = vst [vmem:[%s3334_s29 + $0xd0] sm:$0xff] %v1279_v25  ;;  %v1228_v12 = vmul.f32 %v3251_v9, %v1204_v50  ;;  %v1250_v30 = vmul.f32 %v3263_v29, %v3552_v53  ;;  %v1249_v36 = vmul.f32 %v3263_v29, %v3558_v22  ;;  %vm491_vm8 = vcmp.eq.s32.totalorder %v473_v14, %v3282_v37 }
 0x274   : > { %v894_v51 = vadd.f32 %v3578_v16, %v878_v7  ;;  %v893_v5 = vadd.f32 %v3585_v35, %v877_v38  ;;  %v1227_v4 = vmul.f32 %v3251_v9, %v1203_v52  ;;  %v818_v15 = vmul.f32 %v3286_v20, %v2537_v6 }
 0x275   : > { %v1266_v19 = vadd.f32 %v1250_v30, %v1228_v12  ;;  %vm490_vm9 = vcmp.eq.s32.totalorder %v472_v2, %v3282_v37  ;;  %v817_v10 = vmul.f32 %v3286_v20, %v787_v23  ;;  %2745 = vrcp.f32 %v1966_v1  ;;  %v2565_v20 = vpop.f32.mrb[22].mxu0  ;;  %v3622_v1 = vpop.permute.xlu1 %1990 }
 0x276   : > { %910 = vst [vmem:[%s3334_s29 + $0x68] sm:$0xff] %v894_v51  ;;  %909 = vst [vmem:[%s3334_s29 + $0x60] sm:$0xff] %v893_v5  ;;  %v1265_v25 = vadd.f32 %v1249_v36, %v1227_v4  ;;  %v842_v7 = vmul.f32 %v3292_v18, %v818_v15  ;;  %v3611_v38 = vsel %vm491_vm8, 1.0, %v2881_v3  ;;  %v3617_v37 = vsel %vm490_vm9, 1.0, %v2881_v3  ;;  %v1175_v52 = vpop.f32.mrb[23].mxu0  ;;  %v2572_v30 = vpop.f32.mrb[24].mxu1 }
 0x277   : > { %v1282_v44 = vadd.f32 %v3578_v16, %v1266_v19  ;;  %v841_v14 = vmul.f32 %v3292_v18, %v817_v10  ;;  %v1206_v51 = vmul.f32 %v3307_v39, %v2565_v20  ;;  %v1205_v5 = vmul.f32 %v3307_v39, %v1175_v52  ;;  %v1494_v39 = vpop.f32.mrb[25].mxu1 }
 0x278   : > { %v1281_v50 = vadd.f32 %v3585_v35, %v1265_v25  ;;  %v880_v24 = vadd.f32 %v3257_v28, %v842_v7  ;;  %v1251_v4 = vmul.f32 %v3263_v29, %v3253_v27  ;;  %v1627_v25 = vmul.f32 %v3269_v32, %v3284_v41 }
 0x279   : > { %2310 = vst [vmem:[%s3334_s29 + $0xe8] sm:$0xff] %v1282_v44  ;;  %v879_v2 = vadd.f32 %v3261_v56, %v841_v14  ;;  %v1230_v12 = vmul.f32 %v3251_v9, %v1206_v51  ;;  %v1252_v56 = vmul.f32 %v3263_v29, %v3249_v26  ;;  %v1229_v6 = vmul.f32 %v3251_v9, %v1205_v5  ;;  %v3649_v14 = vpop.permute.xlu1 %2012 }
 0x27a   : > { %2309 = vst [vmem:[%s3334_s29 + $0xe0] sm:$0xff] %v1281_v50  ;;  %v896_v18 = vadd.f32 %v3611_v38, %v880_v24  ;;  %v1626_v29 = vmul.f32 %v3269_v32, %v3288_v21  ;;  %v2600_v20 = vpop.f32.mrb[24].mxu0 }
 0x27b   : > { %v3627_v28 = vpop.eup %2743  ;;  %v895_v3 = vadd.f32 %v3617_v37, %v879_v2  ;;  %v1268_v15 = vadd.f32 %v1252_v56, %v1230_v12  ;;  %v1267_v19 = vadd.f32 %v1251_v4, %v1229_v6  ;;  %v1883_v52 = vpop.f32.mrb[25].mxu0  ;;  %v2016_v56 = vmul.f32 %v3649_v14, %v3284_v41 }
 0x27c   : > { %912 = vst [vmem:[%s3334_s29 + $0x78] sm:$0xff] %v896_v18  ;;  %v1581_v36 = vmul.f32 %v3627_v28, %v2572_v30  ;;  %v1580_v23 = vmul.f32 %v3627_v28, %v1494_v39  ;;  %v2015_v4 = vmul.f32 %v3649_v14, %v3288_v21  ;;  %v1629_v41 = vmul.f32 %v3269_v32, %v3316_v58 }
 0x27d   : > { %911 = vst [vmem:[%s3334_s29 + $0x70] sm:$0xff] %v895_v3  ;;  %v1284_v9 = vadd.f32 %v3611_v38, %v1268_v15  ;;  %v1283_v50 = vadd.f32 %v3617_v37, %v1267_v19  ;;  %v2575_v30 = vpop.f32.mrb[26].mxu1  ;;  %v1628_v21 = vmul.f32 %v3269_v32, %v3322_v0 }
 0x27e   : > { %v1605_v10 = vmul.f32 %v3267_v31, %v1581_v36  ;;  %v1604_v7 = vmul.f32 %v3267_v31, %v1580_v23  ;;  %v1583_v36 = vmul.f32 %v3627_v28, %v2575_v30  ;;  %v1504_v39 = vpop.f32.mrb[27].mxu1 }
 0x27f   : > { %v3647_v44 = vpop.eup %2745  ;;  %2312 = vst [vmem:[%s3334_s29 + $0xf8] sm:$0xff] %v1284_v9  ;;  %2311 = vst [vmem:[%s3334_s29 + $0xf0] sm:$0xff] %v1283_v50  ;;  %v1582_v23 = vmul.f32 %v3627_v28, %v1504_v39 }
 0x280   : > { %v1643_v24 = vadd.f32 %v1627_v25, %v1605_v10  ;;  %v1642_v2 = vadd.f32 %v1626_v29, %v1604_v7  ;;  %v1970_v51 = vmul.f32 %v3647_v44, %v2600_v20  ;;  %v1969_v5 = vmul.f32 %v3647_v44, %v1883_v52 }
 0x281   : > { %v1607_v10 = vmul.f32 %v3267_v31, %v1583_v36  ;;  %v1606_v9 = vmul.f32 %v3267_v31, %v1582_v23 }
 0x282   : > { %v1659_v18 = vadd.f32 %v3302_v45, %v1643_v24  ;;  %v1658_v3 = vadd.f32 %v3310_v48, %v1642_v2  ;;  %v1994_v12 = vmul.f32 %v3622_v1, %v1970_v51  ;;  %v1993_v6 = vmul.f32 %v3622_v1, %v1969_v5  ;;  %v2603_v50 = vpop.f32.mrb[26].mxu0 }
 0x283   : > { %v1645_v29 = vadd.f32 %v1629_v41, %v1607_v10  ;;  %v1644_v24 = vadd.f32 %v1628_v21, %v1606_v9  ;;  %v1972_v20 = vmul.f32 %v3647_v44, %v2603_v50  ;;  %v1893_v2 = vpop.f32.mrb[27].mxu0 }
 0x284   : > { %2333 = vst [vmem:[%s3334_s29 + $0x108] sm:$0xff] %v1659_v18  ;;  %2332 = vst [vmem:[%s3334_s29 + $0x100] sm:$0xff] %v1658_v3  ;;  %v2032_v15 = vadd.f32 %v2016_v56, %v1994_v12  ;;  %v2031_v19 = vadd.f32 %v2015_v4, %v1993_v6  ;;  %v2017_v12 = vmul.f32 %v3649_v14, %v3322_v0 }
 0x285   : > { %v1661_v51 = vadd.f32 %v3376_v43, %v1645_v29  ;;  %v1660_v52 = vadd.f32 %v3385_v46, %v1644_v24  ;;  %v1996_v18 = vmul.f32 %v3622_v1, %v1972_v20  ;;  %v2578_v5 = vpop.f32.mrb[28].mxu1  ;;  %v1630_v0 = vmul.f32 %v3269_v32, %v3398_v62 }
 0x286   : > { %v2048_v25 = vadd.f32 %v3302_v45, %v2032_v15  ;;  %v2047_v7 = vadd.f32 %v3310_v48, %v2031_v19  ;;  %v1971_v45 = vmul.f32 %v3647_v44, %v1893_v2  ;;  %v2018_v48 = vmul.f32 %v3649_v14, %v3316_v58  ;;  %v1514_v30 = vpop.f32.mrb[29].mxu1 }
 0x287   : > { %2335 = vst [vmem:[%s3334_s29 + $0x118] sm:$0xff] %v1661_v51  ;;  %v1585_v56 = vmul.f32 %v3627_v28, %v2578_v5  ;;  %2334 = vst [vmem:[%s3334_s29 + $0x110] sm:$0xff] %v1660_v52  ;;  %v1584_v4 = vmul.f32 %v3627_v28, %v1514_v30  ;;  %v1631_v58 = vmul.f32 %v3269_v32, %v3392_v55 }
 0x288   : > { %2368 = vst [vmem:[%s3334_s29 + $0x188] sm:$0xff] %v2048_v25  ;;  %2367 = vst [vmem:[%s3334_s29 + $0x180] sm:$0xff] %v2047_v7  ;;  %v1995_v3 = vmul.f32 %v3622_v1, %v1971_v45  ;;  %v2034_v6 = vadd.f32 %v2018_v48, %v1996_v18  ;;  %v2019_v2 = vmul.f32 %v3649_v14, %v3398_v62 }
 0x289   : > { %v1609_v39 = vmul.f32 %v3267_v31, %v1585_v56  ;;  %v1608_v23 = vmul.f32 %v3267_v31, %v1584_v4  ;;  %v1632_v62 = vmul.f32 %v3269_v32, %v3438_v49 }
 0x28a   : > { %v2033_v36 = vadd.f32 %v2017_v12, %v1995_v3  ;;  %v2050_v15 = vadd.f32 %v3376_v43, %v2034_v6  ;;  %v2606_v41 = vpop.f32.mrb[28].mxu0 }
 0x28b   : > { %v1647_v10 = vadd.f32 %v1631_v58, %v1609_v39  ;;  %v1646_v25 = vadd.f32 %v1630_v0, %v1608_v23  ;;  %v1974_v9 = vmul.f32 %v3647_v44, %v2606_v41  ;;  %v1903_v21 = vpop.f32.mrb[29].mxu0 }
 0x28c   : > { %v2049_v19 = vadd.f32 %v3385_v46, %v2033_v36  ;;  %2370 = vst [vmem:[%s3334_s29 + $0x198] sm:$0xff] %v2050_v15  ;;  %v1973_v43 = vmul.f32 %v3647_v44, %v1903_v21  ;;  %v2020_v46 = vmul.f32 %v3649_v14, %v3392_v55  ;;  %v1633_v55 = vmul.f32 %v3269_v32, %v3432_v57 }
 0x28d   : > { %v1663_v7 = vadd.f32 %v3418_v63, %v1647_v10  ;;  %v1662_v29 = vadd.f32 %v3425_v40, %v1646_v25  ;;  %v1998_v50 = vmul.f32 %v3622_v1, %v1974_v9  ;;  %v2581_v24 = vpop.f32.mrb[30].mxu1  ;;  %v2021_v10 = vmul.f32 %v3649_v14, %v3438_v49 }
 0x28e   : > { %2369 = vst [vmem:[%s3334_s29 + $0x190] sm:$0xff] %v2049_v19  ;;  %v1997_v20 = vmul.f32 %v3622_v1, %v1973_v43  ;;  %v1587_v51 = vmul.f32 %v3627_v28, %v2581_v24  ;;  %v1524_v45 = vpop.f32.mrb[31].mxu1  ;;  %v1634_v49 = vmul.f32 %v3269_v32, %v3478_v60 }
 0x28f   : > { %2337 = vst [vmem:[%s3334_s29 + $0x128] sm:$0xff] %v1663_v7  ;;  %2336 = vst [vmem:[%s3334_s29 + $0x120] sm:$0xff] %v1662_v29  ;;  %v2036_v52 = vadd.f32 %v2020_v46, %v1998_v50  ;;  %v1586_v18 = vmul.f32 %v3627_v28, %v1524_v45 }
 0x290   : > { %v2035_v48 = vadd.f32 %v2019_v2, %v1997_v20  ;;  %v1611_v5 = vmul.f32 %v3267_v31, %v1587_v51 }
 0x291   : > { %v2052_v3 = vadd.f32 %v3418_v63, %v2036_v52  ;;  %v1610_v12 = vmul.f32 %v3267_v31, %v1586_v18 }
 0x292   : > { %v2051_v56 = vadd.f32 %v3425_v40, %v2035_v48  ;;  %v1649_v30 = vadd.f32 %v1633_v55, %v1611_v5  ;;  %v2609_v6 = vpop.f32.mrb[30].mxu0  ;;  %v2022_v40 = vmul.f32 %v3649_v14, %v3432_v57  ;;  %v1635_v57 = vmul.f32 %v3269_v32, %v3472_v11 }
 0x293   : > { %2372 = vst [vmem:[%s3334_s29 + $0x1a8] sm:$0xff] %v2052_v3  ;;  %v1648_v4 = vadd.f32 %v1632_v62, %v1610_v12  ;;  %v1976_v36 = vmul.f32 %v3647_v44, %v2609_v6  ;;  %v1913_v39 = vpop.f32.mrb[31].mxu0  ;;  %v2023_v3 = vmul.f32 %v3649_v14, %v3478_v60  ;;  %v1636_v60 = vmul.f32 %v3269_v32, %v3518_v13 }
 0x294   : > { %2371 = vst [vmem:[%s3334_s29 + $0x1a0] sm:$0xff] %v2051_v56  ;;  %v1665_v58 = vadd.f32 %v3458_v42, %v1649_v30  ;;  %v1975_v63 = vmul.f32 %v3647_v44, %v1913_v39 }
 0x295   : > { %v1664_v15 = vadd.f32 %v3465_v47, %v1648_v4  ;;  %v2000_v23 = vmul.f32 %v3622_v1, %v1976_v36  ;;  %v2584_v0 = vpop.f32.mrb[32].mxu1 }
 0x296   : > { %2339 = vst [vmem:[%s3334_s29 + $0x138] sm:$0xff] %v1665_v58  ;;  %v1999_v19 = vmul.f32 %v3622_v1, %v1975_v63  ;;  %v1589_v41 = vmul.f32 %v3627_v28, %v2584_v0  ;;  %v1534_v25 = vpop.f32.mrb[33].mxu1 }
 0x297   : > { %2338 = vst [vmem:[%s3334_s29 + $0x130] sm:$0xff] %v1664_v15  ;;  %v2038_v9 = vadd.f32 %v2022_v40, %v2000_v23  ;;  %v1588_v21 = vmul.f32 %v3627_v28, %v1534_v25 }
 0x298   : > { %v2037_v7 = vadd.f32 %v2021_v10, %v1999_v19  ;;  %v1613_v43 = vmul.f32 %v3267_v31, %v1589_v41 }
 0x299   : > { %v2054_v29 = vadd.f32 %v3458_v42, %v2038_v9  ;;  %v1612_v50 = vmul.f32 %v3267_v31, %v1588_v21  ;;  %v2025_v21 = vmul.f32 %v3649_v14, %v3518_v13  ;;  %v1638_v13 = vmul.f32 %v3269_v32, %v3558_v22 }
 0x29a   : > { %v2053_v46 = vadd.f32 %v3465_v47, %v2037_v7  ;;  %v1651_v24 = vadd.f32 %v1635_v57, %v1613_v43  ;;  %v2612_v20 = vpop.f32.mrb[32].mxu0  ;;  %v2024_v47 = vmul.f32 %v3649_v14, %v3472_v11  ;;  %v1637_v11 = vmul.f32 %v3269_v32, %v3512_v8 }
 0x29b   : > { %2374 = vst [vmem:[%s3334_s29 + $0x1b8] sm:$0xff] %v2054_v29  ;;  %v1650_v2 = vadd.f32 %v1634_v49, %v1612_v50  ;;  %v1978_v51 = vmul.f32 %v3647_v44, %v2612_v20  ;;  %v1923_v45 = vpop.f32.mrb[33].mxu0 }
 0x29c   : > { %2373 = vst [vmem:[%s3334_s29 + $0x1b0] sm:$0xff] %v2053_v46  ;;  %v1667_v52 = vadd.f32 %v3498_v17, %v1651_v24  ;;  %v1977_v42 = vmul.f32 %v3647_v44, %v1923_v45 }
 0x29d   : > { %v1666_v18 = vadd.f32 %v3505_v54, %v1650_v2  ;;  %v2002_v48 = vmul.f32 %v3622_v1, %v1978_v51  ;;  %v2587_v5 = vpop.f32.mrb[34].mxu1 }
 0x29e   : > { %2341 = vst [vmem:[%s3334_s29 + $0x148] sm:$0xff] %v1667_v52  ;;  %v2001_v55 = vmul.f32 %v3622_v1, %v1977_v42  ;;  %v1591_v12 = vmul.f32 %v3627_v28, %v2587_v5  ;;  %v1544_v62 = vpop.f32.mrb[35].mxu1 }
 0x29f   : > { %2340 = vst [vmem:[%s3334_s29 + $0x140] sm:$0xff] %v1666_v18  ;;  %v2040_v56 = vadd.f32 %v2024_v47, %v2002_v48  ;;  %v1590_v30 = vmul.f32 %v3627_v28, %v1544_v62 }
 0x2a0   : > { %v2039_v6 = vadd.f32 %v2023_v3, %v2001_v55  ;;  %v1615_v4 = vmul.f32 %v3267_v31, %v1591_v12  ;;  %v2027_v55 = vmul.f32 %v3649_v14, %v3558_v22 }
 0x2a1   : > { %v2056_v36 = vadd.f32 %v3498_v17, %v2040_v56  ;;  %v1614_v39 = vmul.f32 %v3267_v31, %v1590_v30 }
 0x2a2   : > { %v2055_v58 = vadd.f32 %v3505_v54, %v2039_v6  ;;  %v1653_v63 = vadd.f32 %v1637_v11, %v1615_v4  ;;  %v2615_v15 = vpop.f32.mrb[34].mxu0  ;;  %v2026_v54 = vmul.f32 %v3649_v14, %v3512_v8  ;;  %v1639_v8 = vmul.f32 %v3269_v32, %v3552_v53 }
 0x2a3   : > { %2376 = vst [vmem:[%s3334_s29 + $0x1c8] sm:$0xff] %v2056_v36  ;;  %v1652_v23 = vadd.f32 %v1636_v60, %v1614_v39  ;;  %v1980_v40 = vmul.f32 %v3647_v44, %v2615_v15  ;;  %v1933_v0 = vpop.f32.mrb[35].mxu0  ;;  %v2028_v32 = vmul.f32 %v3649_v14, %v3552_v53 }
 0x2a4   : > { %2375 = vst [vmem:[%s3334_s29 + $0x1c0] sm:$0xff] %v2055_v58  ;;  %v1669_v19 = vadd.f32 %v3538_v59, %v1653_v63  ;;  %v1979_v17 = vmul.f32 %v3647_v44, %v1933_v0  ;;  %v2029_v63 = vmul.f32 %v3649_v14, %v3253_v27 }
 0x2a5   : > { %v1668_v10 = vadd.f32 %v3545_v61, %v1652_v23  ;;  %v2004_v41 = vmul.f32 %v3622_v1, %v1980_v40  ;;  %v2590_v25 = vpop.f32.mrb[36].mxu1 }
 0x2a6   : > { %2343 = vst [vmem:[%s3334_s29 + $0x158] sm:$0xff] %v1669_v19  ;;  %v2003_v9 = vmul.f32 %v3622_v1, %v1979_v17  ;;  %v1593_v7 = vmul.f32 %v3627_v28, %v2590_v25  ;;  %v1554_v43 = vpop.f32.mrb[37].mxu1 }
 0x2a7   : > { %2342 = vst [vmem:[%s3334_s29 + $0x150] sm:$0xff] %v1668_v10  ;;  %v2042_v57 = vadd.f32 %v2026_v54, %v2004_v41  ;;  %v1592_v29 = vmul.f32 %v3627_v28, %v1554_v43 }
 0x2a8   : > { %v2041_v50 = vadd.f32 %v2025_v21, %v2003_v9  ;;  %v1617_v49 = vmul.f32 %v3267_v31, %v1593_v7 }
 0x2a9   : > { %v2058_v46 = vadd.f32 %v3538_v59, %v2042_v57  ;;  %v1616_v24 = vmul.f32 %v3267_v31, %v1592_v29 }
 0x2aa   : > { %v2057_v20 = vadd.f32 %v3545_v61, %v2041_v50  ;;  %v1655_v2 = vadd.f32 %v1639_v8, %v1617_v49  ;;  %v2618_v51 = vpop.f32.mrb[36].mxu0 }
 0x2ab   : > { %2378 = vst [vmem:[%s3334_s29 + $0x1d8] sm:$0xff] %v2058_v46  ;;  %v1654_v45 = vadd.f32 %v1638_v13, %v1616_v24  ;;  %v1982_v52 = vmul.f32 %v3647_v44, %v2618_v51  ;;  %v1943_v42 = vpop.f32.mrb[37].mxu0 }
 0x2ac   : > { %2377 = vst [vmem:[%s3334_s29 + $0x1d0] sm:$0xff] %v2057_v20  ;;  %v1671_v18 = vadd.f32 %v3578_v16, %v1655_v2  ;;  %v1981_v59 = vmul.f32 %v3647_v44, %v1943_v42 }
 0x2ad   : > { %v1670_v48 = vadd.f32 %v3585_v35, %v1654_v45  ;;  %v2006_v47 = vmul.f32 %v3622_v1, %v1982_v52  ;;  %v2593_v61 = vpop.f32.mrb[38].mxu1 }
 0x2ae   : > { %2345 = vst [vmem:[%s3334_s29 + $0x168] sm:$0xff] %v1671_v18  ;;  %v2005_v5 = vmul.f32 %v3622_v1, %v1981_v59  ;;  %v1595_v3 = vmul.f32 %v3627_v28, %v2593_v61  ;;  %v1564_v12 = vpop.f32.mrb[39].mxu1 }
 0x2af   : > { %2344 = vst [vmem:[%s3334_s29 + $0x160] sm:$0xff] %v1670_v48  ;;  %v2044_v62 = vadd.f32 %v2028_v32, %v2006_v47  ;;  %v1594_v56 = vmul.f32 %v3627_v28, %v1564_v12 }
 0x2b0   : > { %v2043_v30 = vadd.f32 %v2027_v55, %v2005_v5  ;;  %v1619_v6 = vmul.f32 %v3267_v31, %v1595_v3 }
 0x2b1   : > { %v2060_v53 = vadd.f32 %v3578_v16, %v2044_v62  ;;  %v1618_v4 = vmul.f32 %v3267_v31, %v1594_v56 }
 0x2b2   : > { %v2059_v11 = vadd.f32 %v3585_v35, %v2043_v30  ;;  %v1657_v22 = vadd.f32 %v3273_v33, %v1619_v6  ;;  %v2621_v36 = vpop.f32.mrb[38].mxu0  ;;  %v2030_v35 = vmul.f32 %v3649_v14, %v3249_v26 }
 0x2b3   : > { %2380 = vst [vmem:[%s3334_s29 + $0x1e8] sm:$0xff] %v2060_v53  ;;  %v1656_v39 = vadd.f32 %v3277_v34, %v1618_v4  ;;  %v1984_v28 = vmul.f32 %v3647_v44, %v2621_v36  ;;  %v1953_v60 = vpop.f32.mrb[39].mxu0 }
 0x2b4   : > { %2379 = vst [vmem:[%s3334_s29 + $0x1e0] sm:$0xff] %v2059_v11  ;;  %v1673_v58 = vadd.f32 %v3611_v38, %v1657_v22  ;;  %v1983_v16 = vmul.f32 %v3647_v44, %v1953_v60 }
 0x2b5   : > { %v1672_v31 = vadd.f32 %v3617_v37, %v1656_v39  ;;  %v2008_v33 = vmul.f32 %v3622_v1, %v1984_v28 }
 0x2b6   : > { %2347 = vst [vmem:[%s3334_s29 + $0x178] sm:$0xff] %v1673_v58  ;;  %v2007_v34 = vmul.f32 %v3622_v1, %v1983_v16 }
 0x2b7   : > { %2346 = vst [vmem:[%s3334_s29 + $0x170] sm:$0xff] %v1672_v31  ;;  %v2046_v44 = vadd.f32 %v2030_v35, %v2008_v33 }
 0x2b8   : > { %v2045_v15 = vadd.f32 %v2029_v63, %v2007_v34 }
 0x2b9   : > { %v2062_v23 = vadd.f32 %v3611_v38, %v2046_v44 }
 0x2ba   : > { %v2061_v26 = vadd.f32 %v3617_v37, %v2045_v15 }
 0x2bb   : > { %2382 = vst [vmem:[%s3334_s29 + $0x1f8] sm:$0xff] %v2062_v23 }
 0x2bc   : > { %2381 = vst [vmem:[%s3334_s29 + $0x1f0] sm:$0xff] %v2061_v26 }
 0x2bd   : > { %2818 = shalt.err (!%p2815_p7)
}
 0x2be   : > { %s2819_s29 = scalar_lea.hbm %s3838_s28, 8192  ;;  %s2823_s7 = scalar_lea.hbm %s3890_s3, 16384 }
 0x2bf   : > { %p2820_p9 = scmp.ne.s32.totalorder %s3838_s28, %s2819_s29  ;;  %p2824_p6 = scmp.lt.u32.totalorder %s3838_s28, %s3890_s3 }
 0x2c0   : > { %p2825_p12 = scmp.lt.u32.totalorder %s2823_s7, %s2819_s29  ;;  %p2827_p8 = scmp.lt.u32.totalorder %s2819_s29, %s3838_s28 }
 0x2c1   : > { %p2821_p1 = pnand %p2820_p9, %p3897_p11 }
 0x2c2   : > { %p2826_p13 = por %p2825_p12, %p2824_p6 }
 0x2c3   : > { %p2822_p3 = pneg %p2821_p1 }
 0x2c4   : > { %p2828_p10 = por %p2827_p8, %p2826_p13 }
 0x2c6   : > { %p2829_p0 = pnand %p2828_p10, %p2822_p3 }
 0x2c8   : > { %2832 = shalt.err (!%p2829_p0)
}
 0x2c9   : > { %s2884_s17 = smov 128   ;;  %s2885_s19 = smov 8  }
 0x2ca   : > { %2647 = dma.vmem_to_hbm [thread:$0]  (%p3897_p11), %s3840_s22, 8192, %s3838_s28, %s2086_s16, %s2884_s17, %s2884_s17, %s2885_s19  }
 0x2cb PF: > { %s2127_s20 = sand.u32 1, %s2863_s12   ;;  %p3898_p2 = scmp.ne.s32.totalorder %s3895_s25, 0 }
 0x2cc   : > { %p3899_p4 = scmp.ge.s32.totalorder %s2875_s15, 2  ;;  %s2128_s26 = scalar_lea.sflag [#allocation4], %s2127_s20 }
 0x2ce   : > { %p2655_p5 = pnand %p3899_p4, %p3898_p2 }
 0x2d0   : > { %2854 = dma.done.wait (!%p2655_p5), %s2128_s26, 64  }
 0x2d1   : > { %2856 = vsyncadd (!%p2655_p5), %s2128_s26, 4294967232  ;;  %s2137_s27 = scalar_lea.sflag [#allocation7], %s2127_s20 }
 0x2d2   : > { %2858 = dma.done.wait (!%p2655_p5), %s2137_s27, 8192  }
 0x2d3   : > { %2860 = vsyncadd (!%p2655_p5), %s2137_s27, 4294959104  ;;  %p20_p11 = scmp.ge.s32.totalorder %s2931_s18, 4   ;;  %s3900_s12 = smov %s2867_s13 }
 0x2d4   : > { %s3901_s13 = smov %s2871_s14  ;;  %s3902_s14 = smov %s2943_s21 }
 0x2d5   : > { %s3903_s15 = smov %s2931_s18  ;;  %22 = sbr.rel (!%p20_p11) target bundleno = 7 (0x7), region = 93 }
 0x2dc   :  { %2142 = vsyncpa [#allocation3], 1 }
 0x2dd   :  { %2144 = vsyncpa [#allocation3 + $0x1], 1 }
 0x2de   :  { %2145 = vsyncpa [#allocation4], 1 }
 0x2df   :  { %2147 = vsyncpa [#allocation4 + $0x1], 1 }
 0x2e0   :  { %2148 = vsyncpa [#allocation7], 1 }
 0x2e1   :  { %2150 = vsyncpa [#allocation7 + $0x1], 1 }

</bundles_post_ra>
